<compile_context>
chip_gen: v7x
topology: tpu7x:2x2x1
jax: 0.10.0
libtpu: 0.0.40
codegen_flags: <defaults>
</compile_context>

<pallas_src>
import functools

import numpy as np
import jax
import jax.numpy as jnp
from jax.experimental import pallas as pl
from jax.experimental.pallas import tpu as pltpu


def _round_up(x, m):
    return ((x + m - 1) // m) * m


def _vmem_budget_bytes():
    cap = 64 * 1024 * 1024
    try:
        info = pltpu.get_tpu_info()
        cap = int(getattr(info, "vmem_capacity_bytes", cap)) or cap
    except Exception:
        pass
    return (cap * 3) // 4          # leave headroom for Mosaic internals


def _ncc_kernel(x_ref, out_ref, *, Hout, Hp, Wpk, kh, kw, C, weights,
                keep_channels):
    """One batch-group per grid step.

    x_ref  : (C, Hp, Wpk) f32 VMEM — zero-padded, G images packed on lanes,
             Hp a multiple of 8, Wpk a multiple of 128.
    out_ref: (Hout, Wpk) channel-mean written once, or (C, Hout, Wpk).
    weights: C tuples of kh*kw Python floats (z-normalized template / P).
    """
    inv_p = 1.0 / float(kh * kw)
    inv_c = 1.0 / float(C)

    # TODO(synk): for large C (>~8-16) move the channel loop onto an inner
    # "arbitrary" grid axis with a VMEM accumulator to bound live ranges.
    acc = None
    for c in range(C):                       # channels folded in, unrolled
        xc = x_ref[c]                        # (Hp, Wpk)
        wc = weights[c]

        # kw lane-rolled taps (XLU slot); dx == 0 is the slab itself. Wrap
        # garbage only reaches the discarded 128-pad tail columns.
        x_dx = [xc]
        for dx in range(1, kw):
            x_dx.append(pltpu.roll(xc, Wpk - dx, axis=1))

        # Separable column sums at full height; squares built from the
        # already-rolled taps (no second set of shifted slabs).
        col_s = x_dx[0]
        col_s2 = x_dx[0] * x_dx[0]
        for dx in range(1, kw):
            col_s = col_s + x_dx[dx]
            col_s2 = col_s2 + x_dx[dx] * x_dx[dx]

        # Row accumulation: per-dy weighted sums (constant multipliers) plus
        # one aligned sublane roll each for corr / s / s2 per dy.
        s_full = col_s
        s2_full = col_s2
        corr_full = None
        for dy in range(kh):
            a_dy = x_dx[0] * wc[dy * kw]
            for dx in range(1, kw):
                a_dy = a_dy + x_dx[dx] * wc[dy * kw + dx]
            if dy == 0:
                corr_full = a_dy
            else:
                r = Hp - dy
                corr_full = corr_full + pltpu.roll(a_dy, r, axis=0)
                s_full = s_full + pltpu.roll(col_s, r, axis=0)
                s2_full = s2_full + pltpu.roll(col_s2, r, axis=0)

        corr = corr_full[0:Hout, :]
        s = s_full[0:Hout, :]
        s2 = s2_full[0:Hout, :]

        mean = s * inv_p
        var = s2 * inv_p - mean * mean
        # PyTorch parity: zero variance -> inf, negative (cancellation)
        # variance -> NaN; rsqrt reproduces both and runs on the EUP slot.
        ncc_c = corr * jax.lax.rsqrt(var)

        if keep_channels:
            out_ref[c, :, :] = ncc_c
        else:
            acc = ncc_c if acc is None else acc + ncc_c

    if not keep_channels:
        out_ref[...] = acc * inv_c           # single write, 1/C applied once


def make_ncc(template, keep_channels=False):
    """Builds the NCC forward function for a fixed template (C, kh, kw)."""
    t = np.asarray(template, np.float32)
    C, kh, kw = t.shape
    P = float(kh * kw)

    # channel_normalize: per-channel z-normalization (population std, matching
    # torch .std(unbiased=False)); diagonal conv weights / patch_elements.
    # Baked in as Python float constants (no SMEM table, no scalar loads).
    flat = t.reshape(C, -1)
    t_norm = (flat - flat.mean(axis=-1, keepdims=True)) / flat.std(axis=-1, keepdims=True)
    w = (t_norm / P).astype(np.float32)                      # (C, kh*kw)
    weights = tuple(tuple(float(v) for v in w[c]) for c in range(C))

    ph, pw = kh // 2, kw // 2
    out_ch = C if keep_channels else 1

    def ncc(image):
        image = jnp.asarray(image, jnp.float32)
        N, Cin, H, W = image.shape
        assert Cin == C, "image channels must match template channels"
        Hp = H + 2 * ph
        Wp = W + 2 * pw
        Hout = Hp - kh + 1
        Wout = Wp - kw + 1
        Hp_pad = _round_up(Hp, 8)           # aligned sublane rolls

        # VMEM bytes per packed lane column: double-buffered in/out blocks
        # plus per-channel roll / accumulator temporaries.
        per_lane = 4 * (2 * C * Hp_pad + 2 * out_ch * Hout + (kw + 8) * Hp_pad)
        budget = _vmem_budget_bytes()

        # Pick G: pack G padded images on the lane axis, width rounded up to a
        # multiple of 128 (lane-dense stores, tile-aligned rolls). Minimize
        # total packed lane-columns, prefer bigger G (fewer ~0.35us grid steps).
        g_cap = max(1, min(N, max(1, 1024 // Wp)))
        best_g, best_cost = 1, None
        for g_try in range(1, g_cap + 1):
            wpk_try = _round_up(g_try * Wp, 128)
            if g_try > 1 and wpk_try * per_lane > budget:
                break
            cost = pl.cdiv(N, g_try) * wpk_try
            if best_cost is None or cost <= best_cost:
                best_g, best_cost = g_try, cost
        G = best_g

        Wpk = _round_up(G * Wp, 128)
        num_groups = pl.cdiv(N, G)
        N_pad = num_groups * G

        # Pack: (N,C,H,W) -> (groups, C, Hp_pad, Wpk). Each image keeps its own
        # zero pad, so window taps never bleed across packed images.
        # TODO(synk): fold this pad/transpose into the kernel via manual DMA
        # gather into a zeroed VMEM scratch (memory_space=pl.ANY) to remove the
        # extra HBM round trip of the packed copy.
        x = jnp.pad(image, ((0, N_pad - N), (0, 0),
                            (ph, ph + (Hp_pad - Hp)), (pw, pw)))
        x = x.reshape(num_groups, G, C, Hp_pad, Wp)
        x = jnp.transpose(x, (0, 2, 3, 1, 4)).reshape(num_groups, C, Hp_pad, G * Wp)
        if Wpk > G * Wp:
            x = jnp.pad(x, ((0, 0), (0, 0), (0, 0), (0, Wpk - G * Wp)))

        kernel = functools.partial(
            _ncc_kernel, Hout=Hout, Hp=Hp_pad, Wpk=Wpk, kh=kh, kw=kw, C=C,
            weights=weights, keep_channels=keep_channels)

        if keep_channels:
            out_shape = jax.ShapeDtypeStruct((num_groups, C, Hout, Wpk), jnp.float32)
            out_spec = pl.BlockSpec((None, C, Hout, Wpk), lambda g: (g, 0, 0, 0))
        else:
            out_shape = jax.ShapeDtypeStruct((num_groups, Hout, Wpk), jnp.float32)
            out_spec = pl.BlockSpec((None, Hout, Wpk), lambda g: (g, 0, 0))

        vmem_est = Wpk * per_lane
        vmem_limit = int(min(budget, max(32 * 1024 * 1024, (vmem_est * 3) // 2)))

        # TODO(synk): for large images (v7x: 64 MiB VMEM) add an H row-tile
        # grid axis with a (kh-1)-row halo so the per-step block becomes
        # (C, th+kh-1, Wpk); that also provides >=2 parallel grid steps for
        # v7x's two TensorCores.
        out_packed = pl.pallas_call(
            kernel,
            out_shape=out_shape,
            grid_spec=pltpu.PrefetchScalarGridSpec(
                num_scalar_prefetch=0,
                grid=(num_groups,),
                in_specs=[pl.BlockSpec((None, C, Hp_pad, Wpk),
                                       lambda g: (g, 0, 0, 0))],
                out_specs=out_spec,
            ),
            compiler_params=pltpu.CompilerParams(
                dimension_semantics=("parallel",),
                vmem_limit_bytes=vmem_limit),
        )(x)

        # Un-pack: valid output columns of packed slot i are [i*Wp, i*Wp+Wout).
        parts = [out_packed[..., i * Wp:i * Wp + Wout] for i in range(G)]
        out = jnp.stack(parts, axis=1)       # (groups, G, [C,] Hout, Wout)
        if keep_channels:
            out = out.reshape(N_pad, C, Hout, Wout)[:N]
        else:
            out = out.reshape(N_pad, Hout, Wout)[:N]
        return out

    return ncc


def ncc_reference(image, template):
    """Pure-JAX reference mirroring PyTorch NCC.forward, per-channel output."""
    image = jnp.asarray(image, jnp.float32)
    template = jnp.asarray(template, jnp.float32)
    C, kh, kw = template.shape
    P = float(kh * kw)
    flat = template.reshape(C, -1)
    t_norm = ((flat - flat.mean(-1, keepdims=True)) /
              flat.std(-1, keepdims=True)).reshape(C, kh, kw)
    w = t_norm / P
    ph, pw = kh // 2, kw // 2
    x = jnp.pad(image, ((0, 0), (0, 0), (ph, ph), (pw, pw)))
    Hout = image.shape[2] + 2 * ph - kh + 1
    Wout = image.shape[3] + 2 * pw - kw + 1
    corr = jnp.zeros((image.shape[0], C, Hout, Wout), jnp.float32)
    s = jnp.zeros_like(corr)
    s2 = jnp.zeros_like(corr)
    for dy in range(kh):
        for dx in range(kw):
            patch = x[:, :, dy:dy + Hout, dx:dx + Wout]
            corr = corr + patch * w[None, :, dy, dx, None, None]
            s = s + patch
            s2 = s2 + patch * patch
    mean = s / P
    std = jnp.sqrt(s2 / P - mean * mean)
    return corr / std                        # (N, C, Hout, Wout)


if __name__ == "__main__":
    key = jax.random.PRNGKey(0)
    k_t, k_x = jax.random.split(key)

    # Template (the "patch" given to NCC.__init__): (C, kh, kw)
    template = jax.random.normal(k_t, (4, 5, 5), dtype=jnp.float32)
    # Image batch (NCHW)
    image = jax.random.normal(k_x, (2, 4, 16, 16), dtype=jnp.float32)

    ref_c = jax.block_until_ready(ncc_reference(image, template))   # (2,4,16,16)

    out = jax.block_until_ready(make_ncc(template, keep_channels=False)(image))
    assert out.shape == (2, 16, 16), out.shape
    ref = ref_c.mean(axis=1)
    assert jnp.allclose(out, ref, rtol=1e-3, atol=1e-3), \
        float(jnp.max(jnp.abs(out - ref)))

    out_c = jax.block_until_ready(make_ncc(template, keep_channels=True)(image))
    assert out_c.shape == (2, 4, 16, 16), out_c.shape
    assert jnp.allclose(out_c, ref_c, rtol=1e-3, atol=1e-3), \
        float(jnp.max(jnp.abs(out_c - ref_c)))

    print("KERNEL_OK")
</pallas_src>

<mosaic_0001>
module attributes {stable_mosaic.version = 11 : i64} {
  func.func @_ncc_kernel(%arg0: i32, %arg1: memref<1x4x24x128xf32, #tpu.memory_space<vmem>>, %arg2: memref<1x16x128xf32, #tpu.memory_space<vmem>>) attributes {dimension_semantics = [#tpu.dimension_semantics<parallel>], iteration_bounds = array<i64: 1>, scalar_prefetch = 0 : i64, scratch_operands = 0 : i64, tpu.core_type = #tpu.core_type<tc>, window_params = [{transform_indices = @transform_0, window_bounds = array<i64: 1, 4, 24, 128>}, {transform_indices = @transform_1, window_bounds = array<i64: 1, 16, 128>}]} {
    %c0 = arith.constant 0 : index
    %c0_0 = arith.constant 0 : index
    %c0_1 = arith.constant 0 : index
    %c0_2 = arith.constant 0 : index
    %0 = vector.load %arg1[%c0, %c0_0, %c0_1, %c0_2] : memref<1x4x24x128xf32, #tpu.memory_space<vmem>>, vector<1x1x24x128xf32>
    %1 = vector.shape_cast %0 : vector<1x1x24x128xf32> to vector<24x128xf32>
    %c127_i32 = arith.constant 127 : i32
    %2 = tpu.dynamic_rotate %1 by %c127_i32 dim 1 : vector<24x128xf32>, i32 -> vector<24x128xf32>
    %c126_i32 = arith.constant 126 : i32
    %3 = tpu.dynamic_rotate %1 by %c126_i32 dim 1 : vector<24x128xf32>, i32 -> vector<24x128xf32>
    %c125_i32 = arith.constant 125 : i32
    %4 = tpu.dynamic_rotate %1 by %c125_i32 dim 1 : vector<24x128xf32>, i32 -> vector<24x128xf32>
    %c124_i32 = arith.constant 124 : i32
    %5 = tpu.dynamic_rotate %1 by %c124_i32 dim 1 : vector<24x128xf32>, i32 -> vector<24x128xf32>
    %6 = arith.mulf %1, %1 : vector<24x128xf32>
    %7 = arith.addf %1, %2 : vector<24x128xf32>
    %8 = arith.mulf %2, %2 : vector<24x128xf32>
    %9 = arith.addf %6, %8 : vector<24x128xf32>
    %10 = arith.addf %7, %3 : vector<24x128xf32>
    %11 = arith.mulf %3, %3 : vector<24x128xf32>
    %12 = arith.addf %9, %11 : vector<24x128xf32>
    %13 = arith.addf %10, %4 : vector<24x128xf32>
    %14 = arith.mulf %4, %4 : vector<24x128xf32>
    %15 = arith.addf %12, %14 : vector<24x128xf32>
    %16 = arith.addf %13, %5 : vector<24x128xf32>
    %17 = arith.mulf %5, %5 : vector<24x128xf32>
    %18 = arith.addf %15, %17 : vector<24x128xf32>
    %cst = arith.constant 0.0403929912 : f32
    %19 = vector.broadcast %cst : f32 to vector<24x128xf32>
    %20 = arith.mulf %1, %19 : vector<24x128xf32>
    %cst_3 = arith.constant -0.0369856209 : f32
    %21 = vector.broadcast %cst_3 : f32 to vector<24x128xf32>
    %22 = arith.mulf %2, %21 : vector<24x128xf32>
    %23 = arith.addf %20, %22 : vector<24x128xf32>
    %cst_4 = arith.constant -0.0305791609 : f32
    %24 = vector.broadcast %cst_4 : f32 to vector<24x128xf32>
    %25 = arith.mulf %3, %24 : vector<24x128xf32>
    %26 = arith.addf %23, %25 : vector<24x128xf32>
    %cst_5 = arith.constant -0.0477206223 : f32
    %27 = vector.broadcast %cst_5 : f32 to vector<24x128xf32>
    %28 = arith.mulf %4, %27 : vector<24x128xf32>
    %29 = arith.addf %26, %28 : vector<24x128xf32>
    %cst_6 = arith.constant -0.0355637185 : f32
    %30 = vector.broadcast %cst_6 : f32 to vector<24x128xf32>
    %31 = arith.mulf %5, %30 : vector<24x128xf32>
    %32 = arith.addf %29, %31 : vector<24x128xf32>
    %cst_7 = arith.constant 0.0235763192 : f32
    %33 = vector.broadcast %cst_7 : f32 to vector<24x128xf32>
    %34 = arith.mulf %1, %33 : vector<24x128xf32>
    %cst_8 = arith.constant 0.0290482026 : f32
    %35 = vector.broadcast %cst_8 : f32 to vector<24x128xf32>
    %36 = arith.mulf %2, %35 : vector<24x128xf32>
    %37 = arith.addf %34, %36 : vector<24x128xf32>
    %cst_9 = arith.constant -0.0418162718 : f32
    %38 = vector.broadcast %cst_9 : f32 to vector<24x128xf32>
    %39 = arith.mulf %3, %38 : vector<24x128xf32>
    %40 = arith.addf %37, %39 : vector<24x128xf32>
    %cst_10 = arith.constant 0.067029573 : f32
    %41 = vector.broadcast %cst_10 : f32 to vector<24x128xf32>
    %42 = arith.mulf %4, %41 : vector<24x128xf32>
    %43 = arith.addf %40, %42 : vector<24x128xf32>
    %cst_11 = arith.constant -0.0768703073 : f32
    %44 = vector.broadcast %cst_11 : f32 to vector<24x128xf32>
    %45 = arith.mulf %5, %44 : vector<24x128xf32>
    %46 = arith.addf %43, %45 : vector<24x128xf32>
    %c23_i32 = arith.constant 23 : i32
    %47 = tpu.dynamic_rotate %46 by %c23_i32 dim 0 : vector<24x128xf32>, i32 -> vector<24x128xf32>
    %48 = arith.addf %32, %47 : vector<24x128xf32>
    %c23_i32_12 = arith.constant 23 : i32
    %49 = tpu.dynamic_rotate %16 by %c23_i32_12 dim 0 : vector<24x128xf32>, i32 -> vector<24x128xf32>
    %50 = arith.addf %16, %49 : vector<24x128xf32>
    %c23_i32_13 = arith.constant 23 : i32
    %51 = tpu.dynamic_rotate %18 by %c23_i32_13 dim 0 : vector<24x128xf32>, i32 -> vector<24x128xf32>
    %52 = arith.addf %18, %51 : vector<24x128xf32>
    %cst_14 = arith.constant -0.0524826609 : f32
    %53 = vector.broadcast %cst_14 : f32 to vector<24x128xf32>
    %54 = arith.mulf %1, %53 : vector<24x128xf32>
    %cst_15 = arith.constant 0.00513722142 : f32
    %55 = vector.broadcast %cst_15 : f32 to vector<24x128xf32>
    %56 = arith.mulf %2, %55 : vector<24x128xf32>
    %57 = arith.addf %54, %56 : vector<24x128xf32>
    %cst_16 = arith.constant -0.0469782576 : f32
    %58 = vector.broadcast %cst_16 : f32 to vector<24x128xf32>
    %59 = arith.mulf %3, %58 : vector<24x128xf32>
    %60 = arith.addf %57, %59 : vector<24x128xf32>
    %cst_17 = arith.constant 0.00941815972 : f32
    %61 = vector.broadcast %cst_17 : f32 to vector<24x128xf32>
    %62 = arith.mulf %4, %61 : vector<24x128xf32>
    %63 = arith.addf %60, %62 : vector<24x128xf32>
    %cst_18 = arith.constant 0.0703987479 : f32
    %64 = vector.broadcast %cst_18 : f32 to vector<24x128xf32>
    %65 = arith.mulf %5, %64 : vector<24x128xf32>
    %66 = arith.addf %63, %65 : vector<24x128xf32>
    %c22_i32 = arith.constant 22 : i32
    %67 = tpu.dynamic_rotate %66 by %c22_i32 dim 0 : vector<24x128xf32>, i32 -> vector<24x128xf32>
    %68 = arith.addf %48, %67 : vector<24x128xf32>
    %c22_i32_19 = arith.constant 22 : i32
    %69 = tpu.dynamic_rotate %16 by %c22_i32_19 dim 0 : vector<24x128xf32>, i32 -> vector<24x128xf32>
    %70 = arith.addf %50, %69 : vector<24x128xf32>
    %c22_i32_20 = arith.constant 22 : i32
    %71 = tpu.dynamic_rotate %18 by %c22_i32_20 dim 0 : vector<24x128xf32>, i32 -> vector<24x128xf32>
    %72 = arith.addf %52, %71 : vector<24x128xf32>
    %cst_21 = arith.constant 0.0201812293 : f32
    %73 = vector.broadcast %cst_21 : f32 to vector<24x128xf32>
    %74 = arith.mulf %1, %73 : vector<24x128xf32>
    %cst_22 = arith.constant 0.0238280538 : f32
    %75 = vector.broadcast %cst_22 : f32 to vector<24x128xf32>
    %76 = arith.mulf %2, %75 : vector<24x128xf32>
    %77 = arith.addf %74, %76 : vector<24x128xf32>
    %cst_23 = arith.constant -0.019426778 : f32
    %78 = vector.broadcast %cst_23 : f32 to vector<24x128xf32>
    %79 = arith.mulf %3, %78 : vector<24x128xf32>
    %80 = arith.addf %77, %79 : vector<24x128xf32>
    %cst_24 = arith.constant 3.681330e-02 : f32
    %81 = vector.broadcast %cst_24 : f32 to vector<24x128xf32>
    %82 = arith.mulf %4, %81 : vector<24x128xf32>
    %83 = arith.addf %80, %82 : vector<24x128xf32>
    %cst_25 = arith.constant 0.0143559957 : f32
    %84 = vector.broadcast %cst_25 : f32 to vector<24x128xf32>
    %85 = arith.mulf %5, %84 : vector<24x128xf32>
    %86 = arith.addf %83, %85 : vector<24x128xf32>
    %c21_i32 = arith.constant 21 : i32
    %87 = tpu.dynamic_rotate %86 by %c21_i32 dim 0 : vector<24x128xf32>, i32 -> vector<24x128xf32>
    %88 = arith.addf %68, %87 : vector<24x128xf32>
    %c21_i32_26 = arith.constant 21 : i32
    %89 = tpu.dynamic_rotate %16 by %c21_i32_26 dim 0 : vector<24x128xf32>, i32 -> vector<24x128xf32>
    %90 = arith.addf %70, %89 : vector<24x128xf32>
    %c21_i32_27 = arith.constant 21 : i32
    %91 = tpu.dynamic_rotate %18 by %c21_i32_27 dim 0 : vector<24x128xf32>, i32 -> vector<24x128xf32>
    %92 = arith.addf %72, %91 : vector<24x128xf32>
    %cst_28 = arith.constant -0.0259612817 : f32
    %93 = vector.broadcast %cst_28 : f32 to vector<24x128xf32>
    %94 = arith.mulf %1, %93 : vector<24x128xf32>
    %cst_29 = arith.constant -0.0355336703 : f32
    %95 = vector.broadcast %cst_29 : f32 to vector<24x128xf32>
    %96 = arith.mulf %2, %95 : vector<24x128xf32>
    %97 = arith.addf %94, %96 : vector<24x128xf32>
    %cst_30 = arith.constant 0.030443918 : f32
    %98 = vector.broadcast %cst_30 : f32 to vector<24x128xf32>
    %99 = arith.mulf %3, %98 : vector<24x128xf32>
    %100 = arith.addf %97, %99 : vector<24x128xf32>
    %cst_31 = arith.constant 0.0427762717 : f32
    %101 = vector.broadcast %cst_31 : f32 to vector<24x128xf32>
    %102 = arith.mulf %4, %101 : vector<24x128xf32>
    %103 = arith.addf %100, %102 : vector<24x128xf32>
    %cst_32 = arith.constant 0.0365183838 : f32
    %104 = vector.broadcast %cst_32 : f32 to vector<24x128xf32>
    %105 = arith.mulf %5, %104 : vector<24x128xf32>
    %106 = arith.addf %103, %105 : vector<24x128xf32>
    %c20_i32 = arith.constant 20 : i32
    %107 = tpu.dynamic_rotate %106 by %c20_i32 dim 0 : vector<24x128xf32>, i32 -> vector<24x128xf32>
    %108 = arith.addf %88, %107 : vector<24x128xf32>
    %c20_i32_33 = arith.constant 20 : i32
    %109 = tpu.dynamic_rotate %16 by %c20_i32_33 dim 0 : vector<24x128xf32>, i32 -> vector<24x128xf32>
    %110 = arith.addf %90, %109 : vector<24x128xf32>
    %c20_i32_34 = arith.constant 20 : i32
    %111 = tpu.dynamic_rotate %18 by %c20_i32_34 dim 0 : vector<24x128xf32>, i32 -> vector<24x128xf32>
    %112 = arith.addf %92, %111 : vector<24x128xf32>
    %113 = vector.extract_strided_slice %108 {offsets = [0, 0], sizes = [16, 128], strides = [1, 1]} : vector<24x128xf32> to vector<16x128xf32>
    %114 = vector.extract_strided_slice %110 {offsets = [0, 0], sizes = [16, 128], strides = [1, 1]} : vector<24x128xf32> to vector<16x128xf32>
    %115 = vector.extract_strided_slice %112 {offsets = [0, 0], sizes = [16, 128], strides = [1, 1]} : vector<24x128xf32> to vector<16x128xf32>
    %cst_35 = arith.constant 4.000000e-02 : f32
    %116 = vector.broadcast %cst_35 : f32 to vector<16x128xf32>
    %117 = arith.mulf %114, %116 : vector<16x128xf32>
    %cst_36 = arith.constant 4.000000e-02 : f32
    %118 = vector.broadcast %cst_36 : f32 to vector<16x128xf32>
    %119 = arith.mulf %115, %118 : vector<16x128xf32>
    %120 = arith.mulf %117, %117 : vector<16x128xf32>
    %121 = arith.subf %119, %120 : vector<16x128xf32>
    %122 = math.rsqrt %121 : vector<16x128xf32>
    %123 = arith.mulf %113, %122 : vector<16x128xf32>
    %c0_37 = arith.constant 0 : index
    %c1 = arith.constant 1 : index
    %c0_38 = arith.constant 0 : index
    %c0_39 = arith.constant 0 : index
    %124 = vector.load %arg1[%c0_37, %c1, %c0_38, %c0_39] : memref<1x4x24x128xf32, #tpu.memory_space<vmem>>, vector<1x1x24x128xf32>
    %125 = vector.shape_cast %124 : vector<1x1x24x128xf32> to vector<24x128xf32>
    %c127_i32_40 = arith.constant 127 : i32
    %126 = tpu.dynamic_rotate %125 by %c127_i32_40 dim 1 : vector<24x128xf32>, i32 -> vector<24x128xf32>
    %c126_i32_41 = arith.constant 126 : i32
    %127 = tpu.dynamic_rotate %125 by %c126_i32_41 dim 1 : vector<24x128xf32>, i32 -> vector<24x128xf32>
    %c125_i32_42 = arith.constant 125 : i32
    %128 = tpu.dynamic_rotate %125 by %c125_i32_42 dim 1 : vector<24x128xf32>, i32 -> vector<24x128xf32>
    %c124_i32_43 = arith.constant 124 : i32
    %129 = tpu.dynamic_rotate %125 by %c124_i32_43 dim 1 : vector<24x128xf32>, i32 -> vector<24x128xf32>
    %130 = arith.mulf %125, %125 : vector<24x128xf32>
    %131 = arith.addf %125, %126 : vector<24x128xf32>
    %132 = arith.mulf %126, %126 : vector<24x128xf32>
    %133 = arith.addf %130, %132 : vector<24x128xf32>
    %134 = arith.addf %131, %127 : vector<24x128xf32>
    %135 = arith.mulf %127, %127 : vector<24x128xf32>
    %136 = arith.addf %133, %135 : vector<24x128xf32>
    %137 = arith.addf %134, %128 : vector<24x128xf32>
    %138 = arith.mulf %128, %128 : vector<24x128xf32>
    %139 = arith.addf %136, %138 : vector<24x128xf32>
    %140 = arith.addf %137, %129 : vector<24x128xf32>
    %141 = arith.mulf %129, %129 : vector<24x128xf32>
    %142 = arith.addf %139, %141 : vector<24x128xf32>
    %cst_44 = arith.constant -0.0201249719 : f32
    %143 = vector.broadcast %cst_44 : f32 to vector<24x128xf32>
    %144 = arith.mulf %125, %143 : vector<24x128xf32>
    %cst_45 = arith.constant 0.0256480835 : f32
    %145 = vector.broadcast %cst_45 : f32 to vector<24x128xf32>
    %146 = arith.mulf %126, %145 : vector<24x128xf32>
    %147 = arith.addf %144, %146 : vector<24x128xf32>
    %cst_46 = arith.constant 5.073880e-02 : f32
    %148 = vector.broadcast %cst_46 : f32 to vector<24x128xf32>
    %149 = arith.mulf %127, %148 : vector<24x128xf32>
    %150 = arith.addf %147, %149 : vector<24x128xf32>
    %cst_47 = arith.constant -0.0872042402 : f32
    %151 = vector.broadcast %cst_47 : f32 to vector<24x128xf32>
    %152 = arith.mulf %128, %151 : vector<24x128xf32>
    %153 = arith.addf %150, %152 : vector<24x128xf32>
    %cst_48 = arith.constant 0.0108398832 : f32
    %154 = vector.broadcast %cst_48 : f32 to vector<24x128xf32>
    %155 = arith.mulf %129, %154 : vector<24x128xf32>
    %156 = arith.addf %153, %155 : vector<24x128xf32>
    %cst_49 = arith.constant 0.0564379022 : f32
    %157 = vector.broadcast %cst_49 : f32 to vector<24x128xf32>
    %158 = arith.mulf %125, %157 : vector<24x128xf32>
    %cst_50 = arith.constant -0.042693682 : f32
    %159 = vector.broadcast %cst_50 : f32 to vector<24x128xf32>
    %160 = arith.mulf %126, %159 : vector<24x128xf32>
    %161 = arith.addf %158, %160 : vector<24x128xf32>
    %cst_51 = arith.constant -0.0233204439 : f32
    %162 = vector.broadcast %cst_51 : f32 to vector<24x128xf32>
    %163 = arith.mulf %127, %162 : vector<24x128xf32>
    %164 = arith.addf %161, %163 : vector<24x128xf32>
    %cst_52 = arith.constant 0.0673663318 : f32
    %165 = vector.broadcast %cst_52 : f32 to vector<24x128xf32>
    %166 = arith.mulf %128, %165 : vector<24x128xf32>
    %167 = arith.addf %164, %166 : vector<24x128xf32>
    %cst_53 = arith.constant 0.0227769613 : f32
    %168 = vector.broadcast %cst_53 : f32 to vector<24x128xf32>
    %169 = arith.mulf %129, %168 : vector<24x128xf32>
    %170 = arith.addf %167, %169 : vector<24x128xf32>
    %c23_i32_54 = arith.constant 23 : i32
    %171 = tpu.dynamic_rotate %170 by %c23_i32_54 dim 0 : vector<24x128xf32>, i32 -> vector<24x128xf32>
    %172 = arith.addf %156, %171 : vector<24x128xf32>
    %c23_i32_55 = arith.constant 23 : i32
    %173 = tpu.dynamic_rotate %140 by %c23_i32_55 dim 0 : vector<24x128xf32>, i32 -> vector<24x128xf32>
    %174 = arith.addf %140, %173 : vector<24x128xf32>
    %c23_i32_56 = arith.constant 23 : i32
    %175 = tpu.dynamic_rotate %142 by %c23_i32_56 dim 0 : vector<24x128xf32>, i32 -> vector<24x128xf32>
    %176 = arith.addf %142, %175 : vector<24x128xf32>
    %cst_57 = arith.constant -0.0103503522 : f32
    %177 = vector.broadcast %cst_57 : f32 to vector<24x128xf32>
    %178 = arith.mulf %125, %177 : vector<24x128xf32>
    %cst_58 = arith.constant -0.0614783019 : f32
    %179 = vector.broadcast %cst_58 : f32 to vector<24x128xf32>
    %180 = arith.mulf %126, %179 : vector<24x128xf32>
    %181 = arith.addf %178, %180 : vector<24x128xf32>
    %cst_59 = arith.constant -0.0310343932 : f32
    %182 = vector.broadcast %cst_59 : f32 to vector<24x128xf32>
    %183 = arith.mulf %127, %182 : vector<24x128xf32>
    %184 = arith.addf %181, %183 : vector<24x128xf32>
    %cst_60 = arith.constant -0.0821261182 : f32
    %185 = vector.broadcast %cst_60 : f32 to vector<24x128xf32>
    %186 = arith.mulf %128, %185 : vector<24x128xf32>
    %187 = arith.addf %184, %186 : vector<24x128xf32>
    %cst_61 = arith.constant 0.0476644747 : f32
    %188 = vector.broadcast %cst_61 : f32 to vector<24x128xf32>
    %189 = arith.mulf %129, %188 : vector<24x128xf32>
    %190 = arith.addf %187, %189 : vector<24x128xf32>
    %c22_i32_62 = arith.constant 22 : i32
    %191 = tpu.dynamic_rotate %190 by %c22_i32_62 dim 0 : vector<24x128xf32>, i32 -> vector<24x128xf32>
    %192 = arith.addf %172, %191 : vector<24x128xf32>
    %c22_i32_63 = arith.constant 22 : i32
    %193 = tpu.dynamic_rotate %140 by %c22_i32_63 dim 0 : vector<24x128xf32>, i32 -> vector<24x128xf32>
    %194 = arith.addf %174, %193 : vector<24x128xf32>
    %c22_i32_64 = arith.constant 22 : i32
    %195 = tpu.dynamic_rotate %142 by %c22_i32_64 dim 0 : vector<24x128xf32>, i32 -> vector<24x128xf32>
    %196 = arith.addf %176, %195 : vector<24x128xf32>
    %cst_65 = arith.constant 0.0427841507 : f32
    %197 = vector.broadcast %cst_65 : f32 to vector<24x128xf32>
    %198 = arith.mulf %125, %197 : vector<24x128xf32>
    %cst_66 = arith.constant 0.00780998217 : f32
    %199 = vector.broadcast %cst_66 : f32 to vector<24x128xf32>
    %200 = arith.mulf %126, %199 : vector<24x128xf32>
    %201 = arith.addf %198, %200 : vector<24x128xf32>
    %cst_67 = arith.constant -0.0017342564 : f32
    %202 = vector.broadcast %cst_67 : f32 to vector<24x128xf32>
    %203 = arith.mulf %127, %202 : vector<24x128xf32>
    %204 = arith.addf %201, %203 : vector<24x128xf32>
    %cst_68 = arith.constant 0.0342187472 : f32
    %205 = vector.broadcast %cst_68 : f32 to vector<24x128xf32>
    %206 = arith.mulf %128, %205 : vector<24x128xf32>
    %207 = arith.addf %204, %206 : vector<24x128xf32>
    %cst_69 = arith.constant -0.0108476253 : f32
    %208 = vector.broadcast %cst_69 : f32 to vector<24x128xf32>
    %209 = arith.mulf %129, %208 : vector<24x128xf32>
    %210 = arith.addf %207, %209 : vector<24x128xf32>
    %c21_i32_70 = arith.constant 21 : i32
    %211 = tpu.dynamic_rotate %210 by %c21_i32_70 dim 0 : vector<24x128xf32>, i32 -> vector<24x128xf32>
    %212 = arith.addf %192, %211 : vector<24x128xf32>
    %c21_i32_71 = arith.constant 21 : i32
    %213 = tpu.dynamic_rotate %140 by %c21_i32_71 dim 0 : vector<24x128xf32>, i32 -> vector<24x128xf32>
    %214 = arith.addf %194, %213 : vector<24x128xf32>
    %c21_i32_72 = arith.constant 21 : i32
    %215 = tpu.dynamic_rotate %142 by %c21_i32_72 dim 0 : vector<24x128xf32>, i32 -> vector<24x128xf32>
    %216 = arith.addf %196, %215 : vector<24x128xf32>
    %cst_73 = arith.constant -0.0150648775 : f32
    %217 = vector.broadcast %cst_73 : f32 to vector<24x128xf32>
    %218 = arith.mulf %125, %217 : vector<24x128xf32>
    %cst_74 = arith.constant 0.019030191 : f32
    %219 = vector.broadcast %cst_74 : f32 to vector<24x128xf32>
    %220 = arith.mulf %126, %219 : vector<24x128xf32>
    %221 = arith.addf %218, %220 : vector<24x128xf32>
    %cst_75 = arith.constant -0.0150504196 : f32
    %222 = vector.broadcast %cst_75 : f32 to vector<24x128xf32>
    %223 = arith.mulf %127, %222 : vector<24x128xf32>
    %224 = arith.addf %221, %223 : vector<24x128xf32>
    %cst_76 = arith.constant 0.0125047984 : f32
    %225 = vector.broadcast %cst_76 : f32 to vector<24x128xf32>
    %226 = arith.mulf %128, %225 : vector<24x128xf32>
    %227 = arith.addf %224, %226 : vector<24x128xf32>
    %cst_77 = arith.constant 0.00320936716 : f32
    %228 = vector.broadcast %cst_77 : f32 to vector<24x128xf32>
    %229 = arith.mulf %129, %228 : vector<24x128xf32>
    %230 = arith.addf %227, %229 : vector<24x128xf32>
    %c20_i32_78 = arith.constant 20 : i32
    %231 = tpu.dynamic_rotate %230 by %c20_i32_78 dim 0 : vector<24x128xf32>, i32 -> vector<24x128xf32>
    %232 = arith.addf %212, %231 : vector<24x128xf32>
    %c20_i32_79 = arith.constant 20 : i32
    %233 = tpu.dynamic_rotate %140 by %c20_i32_79 dim 0 : vector<24x128xf32>, i32 -> vector<24x128xf32>
    %234 = arith.addf %214, %233 : vector<24x128xf32>
    %c20_i32_80 = arith.constant 20 : i32
    %235 = tpu.dynamic_rotate %142 by %c20_i32_80 dim 0 : vector<24x128xf32>, i32 -> vector<24x128xf32>
    %236 = arith.addf %216, %235 : vector<24x128xf32>
    %237 = vector.extract_strided_slice %232 {offsets = [0, 0], sizes = [16, 128], strides = [1, 1]} : vector<24x128xf32> to vector<16x128xf32>
    %238 = vector.extract_strided_slice %234 {offsets = [0, 0], sizes = [16, 128], strides = [1, 1]} : vector<24x128xf32> to vector<16x128xf32>
    %239 = vector.extract_strided_slice %236 {offsets = [0, 0], sizes = [16, 128], strides = [1, 1]} : vector<24x128xf32> to vector<16x128xf32>
    %cst_81 = arith.constant 4.000000e-02 : f32
    %240 = vector.broadcast %cst_81 : f32 to vector<16x128xf32>
    %241 = arith.mulf %238, %240 : vector<16x128xf32>
    %cst_82 = arith.constant 4.000000e-02 : f32
    %242 = vector.broadcast %cst_82 : f32 to vector<16x128xf32>
    %243 = arith.mulf %239, %242 : vector<16x128xf32>
    %244 = arith.mulf %241, %241 : vector<16x128xf32>
    %245 = arith.subf %243, %244 : vector<16x128xf32>
    %246 = math.rsqrt %245 : vector<16x128xf32>
    %247 = arith.mulf %237, %246 : vector<16x128xf32>
    %248 = arith.addf %123, %247 : vector<16x128xf32>
    %c0_83 = arith.constant 0 : index
    %c2 = arith.constant 2 : index
    %c0_84 = arith.constant 0 : index
    %c0_85 = arith.constant 0 : index
    %249 = vector.load %arg1[%c0_83, %c2, %c0_84, %c0_85] : memref<1x4x24x128xf32, #tpu.memory_space<vmem>>, vector<1x1x24x128xf32>
    %250 = vector.shape_cast %249 : vector<1x1x24x128xf32> to vector<24x128xf32>
    %c127_i32_86 = arith.constant 127 : i32
    %251 = tpu.dynamic_rotate %250 by %c127_i32_86 dim 1 : vector<24x128xf32>, i32 -> vector<24x128xf32>
    %c126_i32_87 = arith.constant 126 : i32
    %252 = tpu.dynamic_rotate %250 by %c126_i32_87 dim 1 : vector<24x128xf32>, i32 -> vector<24x128xf32>
    %c125_i32_88 = arith.constant 125 : i32
    %253 = tpu.dynamic_rotate %250 by %c125_i32_88 dim 1 : vector<24x128xf32>, i32 -> vector<24x128xf32>
    %c124_i32_89 = arith.constant 124 : i32
    %254 = tpu.dynamic_rotate %250 by %c124_i32_89 dim 1 : vector<24x128xf32>, i32 -> vector<24x128xf32>
    %255 = arith.mulf %250, %250 : vector<24x128xf32>
    %256 = arith.addf %250, %251 : vector<24x128xf32>
    %257 = arith.mulf %251, %251 : vector<24x128xf32>
    %258 = arith.addf %255, %257 : vector<24x128xf32>
    %259 = arith.addf %256, %252 : vector<24x128xf32>
    %260 = arith.mulf %252, %252 : vector<24x128xf32>
    %261 = arith.addf %258, %260 : vector<24x128xf32>
    %262 = arith.addf %259, %253 : vector<24x128xf32>
    %263 = arith.mulf %253, %253 : vector<24x128xf32>
    %264 = arith.addf %261, %263 : vector<24x128xf32>
    %265 = arith.addf %262, %254 : vector<24x128xf32>
    %266 = arith.mulf %254, %254 : vector<24x128xf32>
    %267 = arith.addf %264, %266 : vector<24x128xf32>
    %cst_90 = arith.constant -0.0571829192 : f32
    %268 = vector.broadcast %cst_90 : f32 to vector<24x128xf32>
    %269 = arith.mulf %250, %268 : vector<24x128xf32>
    %cst_91 = arith.constant 0.0543902032 : f32
    %270 = vector.broadcast %cst_91 : f32 to vector<24x128xf32>
    %271 = arith.mulf %251, %270 : vector<24x128xf32>
    %272 = arith.addf %269, %271 : vector<24x128xf32>
    %cst_92 = arith.constant 0.023032153 : f32
    %273 = vector.broadcast %cst_92 : f32 to vector<24x128xf32>
    %274 = arith.mulf %252, %273 : vector<24x128xf32>
    %275 = arith.addf %272, %274 : vector<24x128xf32>
    %cst_93 = arith.constant 0.0484629683 : f32
    %276 = vector.broadcast %cst_93 : f32 to vector<24x128xf32>
    %277 = arith.mulf %253, %276 : vector<24x128xf32>
    %278 = arith.addf %275, %277 : vector<24x128xf32>
    %cst_94 = arith.constant 0.0472076498 : f32
    %279 = vector.broadcast %cst_94 : f32 to vector<24x128xf32>
    %280 = arith.mulf %254, %279 : vector<24x128xf32>
    %281 = arith.addf %278, %280 : vector<24x128xf32>
    %cst_95 = arith.constant -0.025764199 : f32
    %282 = vector.broadcast %cst_95 : f32 to vector<24x128xf32>
    %283 = arith.mulf %250, %282 : vector<24x128xf32>
    %cst_96 = arith.constant 0.0340020657 : f32
    %284 = vector.broadcast %cst_96 : f32 to vector<24x128xf32>
    %285 = arith.mulf %251, %284 : vector<24x128xf32>
    %286 = arith.addf %283, %285 : vector<24x128xf32>
    %cst_97 = arith.constant -0.0317880809 : f32
    %287 = vector.broadcast %cst_97 : f32 to vector<24x128xf32>
    %288 = arith.mulf %252, %287 : vector<24x128xf32>
    %289 = arith.addf %286, %288 : vector<24x128xf32>
    %cst_98 = arith.constant 0.029846441 : f32
    %290 = vector.broadcast %cst_98 : f32 to vector<24x128xf32>
    %291 = arith.mulf %253, %290 : vector<24x128xf32>
    %292 = arith.addf %289, %291 : vector<24x128xf32>
    %cst_99 = arith.constant -0.00782418623 : f32
    %293 = vector.broadcast %cst_99 : f32 to vector<24x128xf32>
    %294 = arith.mulf %254, %293 : vector<24x128xf32>
    %295 = arith.addf %292, %294 : vector<24x128xf32>
    %c23_i32_100 = arith.constant 23 : i32
    %296 = tpu.dynamic_rotate %295 by %c23_i32_100 dim 0 : vector<24x128xf32>, i32 -> vector<24x128xf32>
    %297 = arith.addf %281, %296 : vector<24x128xf32>
    %c23_i32_101 = arith.constant 23 : i32
    %298 = tpu.dynamic_rotate %265 by %c23_i32_101 dim 0 : vector<24x128xf32>, i32 -> vector<24x128xf32>
    %299 = arith.addf %265, %298 : vector<24x128xf32>
    %c23_i32_102 = arith.constant 23 : i32
    %300 = tpu.dynamic_rotate %267 by %c23_i32_102 dim 0 : vector<24x128xf32>, i32 -> vector<24x128xf32>
    %301 = arith.addf %267, %300 : vector<24x128xf32>
    %cst_103 = arith.constant 0.0235920288 : f32
    %302 = vector.broadcast %cst_103 : f32 to vector<24x128xf32>
    %303 = arith.mulf %250, %302 : vector<24x128xf32>
    %cst_104 = arith.constant 0.00975316484 : f32
    %304 = vector.broadcast %cst_104 : f32 to vector<24x128xf32>
    %305 = arith.mulf %251, %304 : vector<24x128xf32>
    %306 = arith.addf %303, %305 : vector<24x128xf32>
    %cst_105 = arith.constant -0.021215314 : f32
    %307 = vector.broadcast %cst_105 : f32 to vector<24x128xf32>
    %308 = arith.mulf %252, %307 : vector<24x128xf32>
    %309 = arith.addf %306, %308 : vector<24x128xf32>
    %cst_106 = arith.constant 0.00447726436 : f32
    %310 = vector.broadcast %cst_106 : f32 to vector<24x128xf32>
    %311 = arith.mulf %253, %310 : vector<24x128xf32>
    %312 = arith.addf %309, %311 : vector<24x128xf32>
    %cst_107 = arith.constant -0.0774255394 : f32
    %313 = vector.broadcast %cst_107 : f32 to vector<24x128xf32>
    %314 = arith.mulf %254, %313 : vector<24x128xf32>
    %315 = arith.addf %312, %314 : vector<24x128xf32>
    %c22_i32_108 = arith.constant 22 : i32
    %316 = tpu.dynamic_rotate %315 by %c22_i32_108 dim 0 : vector<24x128xf32>, i32 -> vector<24x128xf32>
    %317 = arith.addf %297, %316 : vector<24x128xf32>
    %c22_i32_109 = arith.constant 22 : i32
    %318 = tpu.dynamic_rotate %265 by %c22_i32_109 dim 0 : vector<24x128xf32>, i32 -> vector<24x128xf32>
    %319 = arith.addf %299, %318 : vector<24x128xf32>
    %c22_i32_110 = arith.constant 22 : i32
    %320 = tpu.dynamic_rotate %267 by %c22_i32_110 dim 0 : vector<24x128xf32>, i32 -> vector<24x128xf32>
    %321 = arith.addf %301, %320 : vector<24x128xf32>
    %cst_111 = arith.constant -0.0240547508 : f32
    %322 = vector.broadcast %cst_111 : f32 to vector<24x128xf32>
    %323 = arith.mulf %250, %322 : vector<24x128xf32>
    %cst_112 = arith.constant -0.00813316833 : f32
    %324 = vector.broadcast %cst_112 : f32 to vector<24x128xf32>
    %325 = arith.mulf %251, %324 : vector<24x128xf32>
    %326 = arith.addf %323, %325 : vector<24x128xf32>
    %cst_113 = arith.constant 0.0695012212 : f32
    %327 = vector.broadcast %cst_113 : f32 to vector<24x128xf32>
    %328 = arith.mulf %252, %327 : vector<24x128xf32>
    %329 = arith.addf %326, %328 : vector<24x128xf32>
    %cst_114 = arith.constant -0.056682907 : f32
    %330 = vector.broadcast %cst_114 : f32 to vector<24x128xf32>
    %331 = arith.mulf %253, %330 : vector<24x128xf32>
    %332 = arith.addf %329, %331 : vector<24x128xf32>
    %cst_115 = arith.constant -0.0337534398 : f32
    %333 = vector.broadcast %cst_115 : f32 to vector<24x128xf32>
    %334 = arith.mulf %254, %333 : vector<24x128xf32>
    %335 = arith.addf %332, %334 : vector<24x128xf32>
    %c21_i32_116 = arith.constant 21 : i32
    %336 = tpu.dynamic_rotate %335 by %c21_i32_116 dim 0 : vector<24x128xf32>, i32 -> vector<24x128xf32>
    %337 = arith.addf %317, %336 : vector<24x128xf32>
    %c21_i32_117 = arith.constant 21 : i32
    %338 = tpu.dynamic_rotate %265 by %c21_i32_117 dim 0 : vector<24x128xf32>, i32 -> vector<24x128xf32>
    %339 = arith.addf %319, %338 : vector<24x128xf32>
    %c21_i32_118 = arith.constant 21 : i32
    %340 = tpu.dynamic_rotate %267 by %c21_i32_118 dim 0 : vector<24x128xf32>, i32 -> vector<24x128xf32>
    %341 = arith.addf %321, %340 : vector<24x128xf32>
    %cst_119 = arith.constant -0.0407464728 : f32
    %342 = vector.broadcast %cst_119 : f32 to vector<24x128xf32>
    %343 = arith.mulf %250, %342 : vector<24x128xf32>
    %cst_120 = arith.constant -0.0477710962 : f32
    %344 = vector.broadcast %cst_120 : f32 to vector<24x128xf32>
    %345 = arith.mulf %251, %344 : vector<24x128xf32>
    %346 = arith.addf %343, %345 : vector<24x128xf32>
    %cst_121 = arith.constant 9.56464282E-5 : f32
    %347 = vector.broadcast %cst_121 : f32 to vector<24x128xf32>
    %348 = arith.mulf %252, %347 : vector<24x128xf32>
    %349 = arith.addf %346, %348 : vector<24x128xf32>
    %cst_122 = arith.constant 0.0518950857 : f32
    %350 = vector.broadcast %cst_122 : f32 to vector<24x128xf32>
    %351 = arith.mulf %253, %350 : vector<24x128xf32>
    %352 = arith.addf %349, %351 : vector<24x128xf32>
    %cst_123 = arith.constant 0.0360861719 : f32
    %353 = vector.broadcast %cst_123 : f32 to vector<24x128xf32>
    %354 = arith.mulf %254, %353 : vector<24x128xf32>
    %355 = arith.addf %352, %354 : vector<24x128xf32>
    %c20_i32_124 = arith.constant 20 : i32
    %356 = tpu.dynamic_rotate %355 by %c20_i32_124 dim 0 : vector<24x128xf32>, i32 -> vector<24x128xf32>
    %357 = arith.addf %337, %356 : vector<24x128xf32>
    %c20_i32_125 = arith.constant 20 : i32
    %358 = tpu.dynamic_rotate %265 by %c20_i32_125 dim 0 : vector<24x128xf32>, i32 -> vector<24x128xf32>
    %359 = arith.addf %339, %358 : vector<24x128xf32>
    %c20_i32_126 = arith.constant 20 : i32
    %360 = tpu.dynamic_rotate %267 by %c20_i32_126 dim 0 : vector<24x128xf32>, i32 -> vector<24x128xf32>
    %361 = arith.addf %341, %360 : vector<24x128xf32>
    %362 = vector.extract_strided_slice %357 {offsets = [0, 0], sizes = [16, 128], strides = [1, 1]} : vector<24x128xf32> to vector<16x128xf32>
    %363 = vector.extract_strided_slice %359 {offsets = [0, 0], sizes = [16, 128], strides = [1, 1]} : vector<24x128xf32> to vector<16x128xf32>
    %364 = vector.extract_strided_slice %361 {offsets = [0, 0], sizes = [16, 128], strides = [1, 1]} : vector<24x128xf32> to vector<16x128xf32>
    %cst_127 = arith.constant 4.000000e-02 : f32
    %365 = vector.broadcast %cst_127 : f32 to vector<16x128xf32>
    %366 = arith.mulf %363, %365 : vector<16x128xf32>
    %cst_128 = arith.constant 4.000000e-02 : f32
    %367 = vector.broadcast %cst_128 : f32 to vector<16x128xf32>
    %368 = arith.mulf %364, %367 : vector<16x128xf32>
    %369 = arith.mulf %366, %366 : vector<16x128xf32>
    %370 = arith.subf %368, %369 : vector<16x128xf32>
    %371 = math.rsqrt %370 : vector<16x128xf32>
    %372 = arith.mulf %362, %371 : vector<16x128xf32>
    %373 = arith.addf %248, %372 : vector<16x128xf32>
    %c0_129 = arith.constant 0 : index
    %c3 = arith.constant 3 : index
    %c0_130 = arith.constant 0 : index
    %c0_131 = arith.constant 0 : index
    %374 = vector.load %arg1[%c0_129, %c3, %c0_130, %c0_131] : memref<1x4x24x128xf32, #tpu.memory_space<vmem>>, vector<1x1x24x128xf32>
    %375 = vector.shape_cast %374 : vector<1x1x24x128xf32> to vector<24x128xf32>
    %c127_i32_132 = arith.constant 127 : i32
    %376 = tpu.dynamic_rotate %375 by %c127_i32_132 dim 1 : vector<24x128xf32>, i32 -> vector<24x128xf32>
    %c126_i32_133 = arith.constant 126 : i32
    %377 = tpu.dynamic_rotate %375 by %c126_i32_133 dim 1 : vector<24x128xf32>, i32 -> vector<24x128xf32>
    %c125_i32_134 = arith.constant 125 : i32
    %378 = tpu.dynamic_rotate %375 by %c125_i32_134 dim 1 : vector<24x128xf32>, i32 -> vector<24x128xf32>
    %c124_i32_135 = arith.constant 124 : i32
    %379 = tpu.dynamic_rotate %375 by %c124_i32_135 dim 1 : vector<24x128xf32>, i32 -> vector<24x128xf32>
    %380 = arith.mulf %375, %375 : vector<24x128xf32>
    %381 = arith.addf %375, %376 : vector<24x128xf32>
    %382 = arith.mulf %376, %376 : vector<24x128xf32>
    %383 = arith.addf %380, %382 : vector<24x128xf32>
    %384 = arith.addf %381, %377 : vector<24x128xf32>
    %385 = arith.mulf %377, %377 : vector<24x128xf32>
    %386 = arith.addf %383, %385 : vector<24x128xf32>
    %387 = arith.addf %384, %378 : vector<24x128xf32>
    %388 = arith.mulf %378, %378 : vector<24x128xf32>
    %389 = arith.addf %386, %388 : vector<24x128xf32>
    %390 = arith.addf %387, %379 : vector<24x128xf32>
    %391 = arith.mulf %379, %379 : vector<24x128xf32>
    %392 = arith.addf %389, %391 : vector<24x128xf32>
    %cst_136 = arith.constant 0.00967168529 : f32
    %393 = vector.broadcast %cst_136 : f32 to vector<24x128xf32>
    %394 = arith.mulf %375, %393 : vector<24x128xf32>
    %cst_137 = arith.constant 0.0110395215 : f32
    %395 = vector.broadcast %cst_137 : f32 to vector<24x128xf32>
    %396 = arith.mulf %376, %395 : vector<24x128xf32>
    %397 = arith.addf %394, %396 : vector<24x128xf32>
    %cst_138 = arith.constant 0.0169622675 : f32
    %398 = vector.broadcast %cst_138 : f32 to vector<24x128xf32>
    %399 = arith.mulf %377, %398 : vector<24x128xf32>
    %400 = arith.addf %397, %399 : vector<24x128xf32>
    %cst_139 = arith.constant 0.0227263793 : f32
    %401 = vector.broadcast %cst_139 : f32 to vector<24x128xf32>
    %402 = arith.mulf %378, %401 : vector<24x128xf32>
    %403 = arith.addf %400, %402 : vector<24x128xf32>
    %cst_140 = arith.constant -0.0130891027 : f32
    %404 = vector.broadcast %cst_140 : f32 to vector<24x128xf32>
    %405 = arith.mulf %379, %404 : vector<24x128xf32>
    %406 = arith.addf %403, %405 : vector<24x128xf32>
    %cst_141 = arith.constant -0.0329145342 : f32
    %407 = vector.broadcast %cst_141 : f32 to vector<24x128xf32>
    %408 = arith.mulf %375, %407 : vector<24x128xf32>
    %cst_142 = arith.constant 0.0462683886 : f32
    %409 = vector.broadcast %cst_142 : f32 to vector<24x128xf32>
    %410 = arith.mulf %376, %409 : vector<24x128xf32>
    %411 = arith.addf %408, %410 : vector<24x128xf32>
    %cst_143 = arith.constant -0.0144172767 : f32
    %412 = vector.broadcast %cst_143 : f32 to vector<24x128xf32>
    %413 = arith.mulf %377, %412 : vector<24x128xf32>
    %414 = arith.addf %411, %413 : vector<24x128xf32>
    %cst_144 = arith.constant -0.0739087462 : f32
    %415 = vector.broadcast %cst_144 : f32 to vector<24x128xf32>
    %416 = arith.mulf %378, %415 : vector<24x128xf32>
    %417 = arith.addf %414, %416 : vector<24x128xf32>
    %cst_145 = arith.constant -0.0307532307 : f32
    %418 = vector.broadcast %cst_145 : f32 to vector<24x128xf32>
    %419 = arith.mulf %379, %418 : vector<24x128xf32>
    %420 = arith.addf %417, %419 : vector<24x128xf32>
    %c23_i32_146 = arith.constant 23 : i32
    %421 = tpu.dynamic_rotate %420 by %c23_i32_146 dim 0 : vector<24x128xf32>, i32 -> vector<24x128xf32>
    %422 = arith.addf %406, %421 : vector<24x128xf32>
    %c23_i32_147 = arith.constant 23 : i32
    %423 = tpu.dynamic_rotate %390 by %c23_i32_147 dim 0 : vector<24x128xf32>, i32 -> vector<24x128xf32>
    %424 = arith.addf %390, %423 : vector<24x128xf32>
    %c23_i32_148 = arith.constant 23 : i32
    %425 = tpu.dynamic_rotate %392 by %c23_i32_148 dim 0 : vector<24x128xf32>, i32 -> vector<24x128xf32>
    %426 = arith.addf %392, %425 : vector<24x128xf32>
    %cst_149 = arith.constant 0.0609124154 : f32
    %427 = vector.broadcast %cst_149 : f32 to vector<24x128xf32>
    %428 = arith.mulf %375, %427 : vector<24x128xf32>
    %cst_150 = arith.constant -0.0220603347 : f32
    %429 = vector.broadcast %cst_150 : f32 to vector<24x128xf32>
    %430 = arith.mulf %376, %429 : vector<24x128xf32>
    %431 = arith.addf %428, %430 : vector<24x128xf32>
    %cst_151 = arith.constant 0.0902374386 : f32
    %432 = vector.broadcast %cst_151 : f32 to vector<24x128xf32>
    %433 = arith.mulf %377, %432 : vector<24x128xf32>
    %434 = arith.addf %431, %433 : vector<24x128xf32>
    %cst_152 = arith.constant -0.0276142433 : f32
    %435 = vector.broadcast %cst_152 : f32 to vector<24x128xf32>
    %436 = arith.mulf %378, %435 : vector<24x128xf32>
    %437 = arith.addf %434, %436 : vector<24x128xf32>
    %cst_153 = arith.constant 0.0419733301 : f32
    %438 = vector.broadcast %cst_153 : f32 to vector<24x128xf32>
    %439 = arith.mulf %379, %438 : vector<24x128xf32>
    %440 = arith.addf %437, %439 : vector<24x128xf32>
    %c22_i32_154 = arith.constant 22 : i32
    %441 = tpu.dynamic_rotate %440 by %c22_i32_154 dim 0 : vector<24x128xf32>, i32 -> vector<24x128xf32>
    %442 = arith.addf %422, %441 : vector<24x128xf32>
    %c22_i32_155 = arith.constant 22 : i32
    %443 = tpu.dynamic_rotate %390 by %c22_i32_155 dim 0 : vector<24x128xf32>, i32 -> vector<24x128xf32>
    %444 = arith.addf %424, %443 : vector<24x128xf32>
    %c22_i32_156 = arith.constant 22 : i32
    %445 = tpu.dynamic_rotate %392 by %c22_i32_156 dim 0 : vector<24x128xf32>, i32 -> vector<24x128xf32>
    %446 = arith.addf %426, %445 : vector<24x128xf32>
    %cst_157 = arith.constant -0.0383958295 : f32
    %447 = vector.broadcast %cst_157 : f32 to vector<24x128xf32>
    %448 = arith.mulf %375, %447 : vector<24x128xf32>
    %cst_158 = arith.constant 0.0347307622 : f32
    %449 = vector.broadcast %cst_158 : f32 to vector<24x128xf32>
    %450 = arith.mulf %376, %449 : vector<24x128xf32>
    %451 = arith.addf %448, %450 : vector<24x128xf32>
    %cst_159 = arith.constant 0.00380960177 : f32
    %452 = vector.broadcast %cst_159 : f32 to vector<24x128xf32>
    %453 = arith.mulf %377, %452 : vector<24x128xf32>
    %454 = arith.addf %451, %453 : vector<24x128xf32>
    %cst_160 = arith.constant -0.0030926289 : f32
    %455 = vector.broadcast %cst_160 : f32 to vector<24x128xf32>
    %456 = arith.mulf %378, %455 : vector<24x128xf32>
    %457 = arith.addf %454, %456 : vector<24x128xf32>
    %cst_161 = arith.constant 0.0596190318 : f32
    %458 = vector.broadcast %cst_161 : f32 to vector<24x128xf32>
    %459 = arith.mulf %379, %458 : vector<24x128xf32>
    %460 = arith.addf %457, %459 : vector<24x128xf32>
    %c21_i32_162 = arith.constant 21 : i32
    %461 = tpu.dynamic_rotate %460 by %c21_i32_162 dim 0 : vector<24x128xf32>, i32 -> vector<24x128xf32>
    %462 = arith.addf %442, %461 : vector<24x128xf32>
    %c21_i32_163 = arith.constant 21 : i32
    %463 = tpu.dynamic_rotate %390 by %c21_i32_163 dim 0 : vector<24x128xf32>, i32 -> vector<24x128xf32>
    %464 = arith.addf %444, %463 : vector<24x128xf32>
    %c21_i32_164 = arith.constant 21 : i32
    %465 = tpu.dynamic_rotate %392 by %c21_i32_164 dim 0 : vector<24x128xf32>, i32 -> vector<24x128xf32>
    %466 = arith.addf %446, %465 : vector<24x128xf32>
    %cst_165 = arith.constant -0.0230783336 : f32
    %467 = vector.broadcast %cst_165 : f32 to vector<24x128xf32>
    %468 = arith.mulf %375, %467 : vector<24x128xf32>
    %cst_166 = arith.constant -0.0607945696 : f32
    %469 = vector.broadcast %cst_166 : f32 to vector<24x128xf32>
    %470 = arith.mulf %376, %469 : vector<24x128xf32>
    %471 = arith.addf %468, %470 : vector<24x128xf32>
    %cst_167 = arith.constant 0.0164390802 : f32
    %472 = vector.broadcast %cst_167 : f32 to vector<24x128xf32>
    %473 = arith.mulf %377, %472 : vector<24x128xf32>
    %474 = arith.addf %471, %473 : vector<24x128xf32>
    %cst_168 = arith.constant -0.0199771952 : f32
    %475 = vector.broadcast %cst_168 : f32 to vector<24x128xf32>
    %476 = arith.mulf %378, %475 : vector<24x128xf32>
    %477 = arith.addf %474, %476 : vector<24x128xf32>
    %cst_169 = arith.constant -0.0542938896 : f32
    %478 = vector.broadcast %cst_169 : f32 to vector<24x128xf32>
    %479 = arith.mulf %379, %478 : vector<24x128xf32>
    %480 = arith.addf %477, %479 : vector<24x128xf32>
    %c20_i32_170 = arith.constant 20 : i32
    %481 = tpu.dynamic_rotate %480 by %c20_i32_170 dim 0 : vector<24x128xf32>, i32 -> vector<24x128xf32>
    %482 = arith.addf %462, %481 : vector<24x128xf32>
    %c20_i32_171 = arith.constant 20 : i32
    %483 = tpu.dynamic_rotate %390 by %c20_i32_171 dim 0 : vector<24x128xf32>, i32 -> vector<24x128xf32>
    %484 = arith.addf %464, %483 : vector<24x128xf32>
    %c20_i32_172 = arith.constant 20 : i32
    %485 = tpu.dynamic_rotate %392 by %c20_i32_172 dim 0 : vector<24x128xf32>, i32 -> vector<24x128xf32>
    %486 = arith.addf %466, %485 : vector<24x128xf32>
    %487 = vector.extract_strided_slice %482 {offsets = [0, 0], sizes = [16, 128], strides = [1, 1]} : vector<24x128xf32> to vector<16x128xf32>
    %488 = vector.extract_strided_slice %484 {offsets = [0, 0], sizes = [16, 128], strides = [1, 1]} : vector<24x128xf32> to vector<16x128xf32>
    %489 = vector.extract_strided_slice %486 {offsets = [0, 0], sizes = [16, 128], strides = [1, 1]} : vector<24x128xf32> to vector<16x128xf32>
    %cst_173 = arith.constant 4.000000e-02 : f32
    %490 = vector.broadcast %cst_173 : f32 to vector<16x128xf32>
    %491 = arith.mulf %488, %490 : vector<16x128xf32>
    %cst_174 = arith.constant 4.000000e-02 : f32
    %492 = vector.broadcast %cst_174 : f32 to vector<16x128xf32>
    %493 = arith.mulf %489, %492 : vector<16x128xf32>
    %494 = arith.mulf %491, %491 : vector<16x128xf32>
    %495 = arith.subf %493, %494 : vector<16x128xf32>
    %496 = math.rsqrt %495 : vector<16x128xf32>
    %497 = arith.mulf %487, %496 : vector<16x128xf32>
    %498 = arith.addf %373, %497 : vector<16x128xf32>
    %cst_175 = arith.constant 2.500000e-01 : f32
    %499 = vector.broadcast %cst_175 : f32 to vector<16x128xf32>
    %500 = arith.mulf %498, %499 : vector<16x128xf32>
    %c0_176 = arith.constant 0 : index
    %c0_177 = arith.constant 0 : index
    %c0_178 = arith.constant 0 : index
    %501 = vector.load %arg2[%c0_176, %c0_177, %c0_178] : memref<1x16x128xf32, #tpu.memory_space<vmem>>, vector<1x16x128xf32>
    %502 = vector.shape_cast %501 : vector<1x16x128xf32> to vector<16x128xf32>
    %503 = vector.shape_cast %500 : vector<16x128xf32> to vector<1x16x128xf32>
    tpu.vector_store %arg2[%c0_176, %c0_177, %c0_178], %503 {strides = array<i32>} : memref<1x16x128xf32, #tpu.memory_space<vmem>>, vector<1x16x128xf32>,
    return
  }
  func.func @transform_0(%arg0: i32) -> (i32, i32, i32, i32) {
    %c0_i32 = arith.constant 0 : i32
    %c0_i32_0 = arith.constant 0 : i32
    %c0_i32_1 = arith.constant 0 : i32
    %c0_i32_2 = arith.constant 0 : i32
    return %arg0, %c0_i32, %c0_i32_0, %c0_i32_1 : i32, i32, i32, i32
  }
  func.func @transform_1(%arg0: i32) -> (i32, i32, i32) {
    %c0_i32 = arith.constant 0 : i32
    %c0_i32_0 = arith.constant 0 : i32
    %c0_i32_1 = arith.constant 0 : i32
    return %arg0, %c0_i32, %c0_i32_0 : i32, i32, i32
  }
}

</mosaic_0001>

<bundles_post_ra>
// kernel: tpu_custom_call.1
= control target key start
LH: loop header
LB: loop body
LE: loop exit
PB: predicated region body
PF: predicated region fallthrough
CT: control target
= control target key end

     0   :  { %6 = vsyncpa [#allocation3], 0  ;;  %s3300_s0 = inlined_call_operand.hbm [shape: f32[1,4,24,128], index: 0, kind: input, shape index: {}]   ;;  %s3301_s1 = inlined_call_operand.hbm [shape: f32[1,16,128], index: 1, kind: output, shape index: {}]  }
   0x1   :  { %7 = vsyncpa [#allocation4], 0  ;;  %s1283_s6 = smov [#allocation2]   ;;  %s1235_s10 = scalar_lea.hbm %s3300_s0, 1536 }
   0x2   :  { %s13_s7 = sshll.u32 %s1283_s6, 4  ;;  %p1236_p0 = scmp.ne.s32.totalorder %s3300_s0, %s1235_s10  ;;  %s14_s7 = int_to_ptr.vmem [resolvable:$true] %s13_s7 }
   0x3   :  { %p1239_p1 = scmp.lt.u32.totalorder %s1235_s10, %s3300_s0 }
   0x5   :  { %p1241_p2 = pnand %p1239_p1, %p1236_p0 }
   0x7   :  { %1244 = shalt.err (!%p1241_p2)
}
   0x8   :  { %s1245_s15 = scalar_lea.vmem %s14_s7, 1536  ;;  %p1250_p4 = scmp.lt.s32.totalorder %s14_s7, %s14_s7 }
   0x9   :  { %p1246_p3 = scmp.ne.s32.totalorder %s14_s7, %s1245_s15  ;;  %p1251_p5 = scmp.lt.s32.totalorder %s1245_s15, %s1245_s15 }
   0xb   :  { %p1252_p6 = por %p1251_p5, %p1250_p4 }
   0xd   :  { %p1253_p7 = pnand %p1252_p6, %p1246_p3 }
   0xf   :  { %1256 = shalt.err (!%p1253_p7)
}
  0x10   :  { %s1284_s16 = smov 128   ;;  %s1285_s17 = smov 8  }
  0x11   :  { %19 = dma.hbm_to_vmem [thread:$0]  %s3300_s0, 1536, %s14_s7, [#allocation3], %s1284_s16, %s1284_s16, %s1285_s17  }
  0x12   :  { %1279 = dma.done.wait [#allocation3], 1536  }
  0x13   :  { %1280 = vsyncadd [#allocation3], 4294965760  ;;  %v1316_v0 = vld [vmem:[#allocation2 + $0x10] sm:$0xff]  ;;  %v1318_v1 = vld [vmem:[#allocation2] sm:$0xff]  ;;  %s1286_s20 = smov 127   ;;  %s1287_s0 = smov 126  }
  0x14   :  { %30 = vrot.lane.b32.xlu1 %v1316_v0, %s1286_s20  ;;  %26 = vrot.lane.b32.xlu0 %v1318_v1, %s1286_s20  ;;  %v1324_v2 = vld [vmem:[#allocation2 + $0x18] sm:$0xff]  ;;  %v1326_v3 = vld [vmem:[#allocation2 + $0x8] sm:$0xff]  ;;  %v1334_v5 = vld [vmem:[#allocation2 + $0x20] sm:$0xff]  ;;  %s1288_s21 = smov 125   ;;  %s1289_s22 = smov 124   ;;  %v52_v26 = vmul.f32 %v1316_v0, %v1316_v0  ;;  %v50_v30 = vmul.f32 %v1318_v1, %v1318_v1 }
  0x15   :  { %v1332_v4 = vld [vmem:[#allocation2 + $0x28] sm:$0xff]  ;;  %v1352_v6 = vld [vmem:[#allocation2 + $0x38] sm:$0xff]  ;;  %v1354_v7 = vld [vmem:[#allocation2 + $0x30] sm:$0xff]  ;;  %v109_v12 = vmul.f32 0.02357632, %v1316_v0  ;;  %v345_v34 = vmul.f32 %v1324_v2, %v1324_v2  ;;  %v51_v38 = vmul.f32 %v1326_v3, %v1326_v3  ;;  %v1505_v48 = vmul.f32 %v1334_v5, %v1334_v5  ;;  %s1290_s23 = smov [#allocation5]  }
  0x16   :  { %v1360_v8 = vld [vmem:[#allocation2 + $0x40] sm:$0xff]  ;;  %v1382_v9 = vld [vmem:[#allocation2 + $0x50] sm:$0xff]  ;;  %v1384_v10 = vld [vmem:[#allocation2 + $0x48] sm:$0xff]  ;;  %v160_v13 = vmul.f32 -0.05248266, %v1316_v0  ;;  %v1492_v42 = vmul.f32 %v1332_v4, %v1332_v4  ;;  %s1199_s24 = sshll.u32 %s1290_s23, 4  ;;  %s1200_s24 = int_to_ptr.vmem [resolvable:$true] %s1199_s24 }
  0x17   :  { %3357 = vst [vmem:[#allocation8_spill] sm:$0xff] %v1382_v9  ;;  %3358 = vst [vmem:[#allocation9_spill] sm:$0xff] %v1384_v10  ;;  %v1390_v11 = vld [vmem:[#allocation2 + $0x58] sm:$0xff]  ;;  %v209_v14 = vmul.f32 0.02018123, %v1316_v0  ;;  %s1257_s25 = scalar_lea.vmem %s1200_s24, 256  ;;  %p1262_p9 = scmp.lt.s32.totalorder %s1200_s24, %s1200_s24 }
  0x18   :  { %321 = vrot.lane.b32.xlu1 %v1324_v2, %s1286_s20  ;;  %28 = vrot.lane.b32.xlu0 %v1326_v3, %s1286_s20  ;;  %3359 = vst [vmem:[#allocation10_spill] sm:$0xff] %v1390_v11  ;;  %v258_v15 = vmul.f32 -0.025961282, %v1316_v0  ;;  %v89_v16 = vmul.f32 0.04039299, %v1318_v1  ;;  %p1258_p8 = scmp.ne.s32.totalorder %s1200_s24, %s1257_s25  ;;  %p1263_p10 = scmp.lt.s32.totalorder %s1257_s25, %s1257_s25 }
  0x19   :  { %v107_v17 = vmul.f32 0.02357632, %v1318_v1  ;;  %v158_v18 = vmul.f32 -0.05248266, %v1318_v1  ;;  %v207_v19 = vmul.f32 0.02018123, %v1318_v1 }
  0x1a   :  { %v256_v20 = vmul.f32 -0.025961282, %v1318_v1  ;;  %v384_v21 = vmul.f32 -0.020124972, %v1324_v2  ;;  %v1435_v22 = vmul.f32 0.056437902, %v1324_v2  ;;  %p1264_p11 = por %p1263_p10, %p1262_p9 }
  0x1b   :  { %v1438_v23 = vmul.f32 -0.010350352, %v1324_v2  ;;  %v1441_v24 = vmul.f32 0.04278415, %v1324_v2  ;;  %v1444_v25 = vmul.f32 -0.015064877, %v1324_v2 }
  0x1c   :  { %325 = vrot.lane.b32.xlu1 %v1332_v4, %s1286_s20  ;;  %323 = vrot.lane.b32.xlu0 %v1334_v5, %s1286_s20  ;;  %v1449_v27 = vmul.f32 0.04039299, %v1326_v3  ;;  %v1452_v28 = vmul.f32 0.02357632, %v1326_v3  ;;  %v1455_v29 = vmul.f32 -0.05248266, %v1326_v3  ;;  %p1265_p12 = pnand %p1264_p11, %p1258_p8 }
  0x1d   :  { %v1460_v31 = vmul.f32 0.02018123, %v1326_v3  ;;  %v1463_v32 = vmul.f32 -0.025961282, %v1326_v3  ;;  %v1466_v33 = vmul.f32 0.056437902, %v1332_v4 }
  0x1e   :  { %v1471_v35 = vmul.f32 -0.010350352, %v1332_v4  ;;  %v1474_v36 = vmul.f32 0.04278415, %v1332_v4  ;;  %v1477_v37 = vmul.f32 -0.015064877, %v1332_v4 }
  0x1f   :  { %v1482_v39 = vmul.f32 -0.020124972, %v1334_v5  ;;  %v1485_v40 = vmul.f32 0.056437902, %v1334_v5  ;;  %v1488_v41 = vmul.f32 -0.010350352, %v1334_v5 }
  0x20   :  { %34 = vrot.lane.b32.xlu1 %v1326_v3, %s1287_s0  ;;  %32 = vrot.lane.b32.xlu0 %v1318_v1, %s1287_s0  ;;  %v1495_v43 = vmul.f32 0.04278415, %v1334_v5  ;;  %v1498_v44 = vmul.f32 -0.015064877, %v1334_v5  ;;  %v1501_v45 = vmul.f32 -0.05718292, %v1352_v6 }
  0x21   :  { %v1508_v49 = vmul.f32 -0.025764199, %v1352_v6  ;;  %v1511_v50 = vmul.f32 0.023592029, %v1352_v6  ;;  %v1514_v51 = vmul.f32 -0.02405475, %v1352_v6 }
  0x22   :  { %3360 = vst [vmem:[#allocation11_spill] sm:$0xff] %v1501_v45 }
  0x23   :  { %3361 = vst [vmem:[#allocation12_spill] sm:$0xff] %v1508_v49  ;;  %3362 = vst [vmem:[#allocation13_spill] sm:$0xff] %v1511_v50 }
  0x24   :  { %327 = vrot.lane.b32.xlu1 %v1324_v2, %s1287_s0  ;;  %36 = vrot.lane.b32.xlu0 %v1316_v0, %s1287_s0  ;;  %3363 = vst [vmem:[#allocation14_spill] sm:$0xff] %v1514_v51 }
  0x28   :  { %331 = vrot.lane.b32.xlu1 %v1332_v4, %s1287_s0  ;;  %329 = vrot.lane.b32.xlu0 %v1334_v5, %s1287_s0 }
  0x2c   :  { %614 = vrot.lane.b32.xlu1 %v1352_v6, %s1286_s20  ;;  %612 = vrot.lane.b32.xlu0 %v1354_v7, %s1286_s20 }
  0x30   :  { %38 = vrot.lane.b32.xlu1 %v1318_v1, %s1288_s21  ;;  %616 = vrot.lane.b32.xlu0 %v1360_v8, %s1286_s20 }
  0x34   :  { %42 = vrot.lane.b32.xlu1 %v1316_v0, %s1288_s21  ;;  %40 = vrot.lane.b32.xlu0 %v1326_v3, %s1288_s21 }
  0x38   :  { %335 = vrot.lane.b32.xlu1 %v1334_v5, %s1288_s21  ;;  %333 = vrot.lane.b32.xlu0 %v1324_v2, %s1288_s21 }
  0x3c   :  { %618 = vrot.lane.b32.xlu1 %v1354_v7, %s1287_s0  ;;  %337 = vrot.lane.b32.xlu0 %v1332_v4, %s1288_s21 }
  0x40   :  { %622 = vrot.lane.b32.xlu1 %v1360_v8, %s1287_s0  ;;  %620 = vrot.lane.b32.xlu0 %v1352_v6, %s1287_s0 }
  0x44   :  { %905 = vrot.lane.b32.xlu1 %v1382_v9, %s1286_s20  ;;  %903 = vrot.lane.b32.xlu0 %v1384_v10, %s1286_s20 }
  0x48   :  { %44 = vrot.lane.b32.xlu1 %v1318_v1, %s1289_s22  ;;  %907 = vrot.lane.b32.xlu0 %v1390_v11, %s1286_s20 }
  0x4c   :  { %48 = vrot.lane.b32.xlu1 %v1316_v0, %s1289_s22  ;;  %46 = vrot.lane.b32.xlu0 %v1326_v3, %s1289_s22 }
  0x50   :  { %341 = vrot.lane.b32.xlu1 %v1334_v5, %s1289_s22  ;;  %339 = vrot.lane.b32.xlu0 %v1324_v2, %s1289_s22 }
  0x54   :  { %624 = vrot.lane.b32.xlu1 %v1354_v7, %s1288_s21  ;;  %343 = vrot.lane.b32.xlu0 %v1332_v4, %s1289_s22 }
  0x58   :  { %628 = vrot.lane.b32.xlu1 %v1360_v8, %s1288_s21  ;;  %626 = vrot.lane.b32.xlu0 %v1352_v6, %s1288_s21 }
  0x5c   :  { %911 = vrot.lane.b32.xlu1 %v1382_v9, %s1287_s0  ;;  %909 = vrot.lane.b32.xlu0 %v1384_v10, %s1287_s0 }
  0x60   :  { %630 = vrot.lane.b32.xlu1 %v1354_v7, %s1289_s22  ;;  %913 = vrot.lane.b32.xlu0 %v1390_v11, %s1287_s0 }
  0x64   :  { %634 = vrot.lane.b32.xlu1 %v1360_v8, %s1289_s22  ;;  %632 = vrot.lane.b32.xlu0 %v1352_v6, %s1289_s22 }
  0x68   :  { %917 = vrot.lane.b32.xlu1 %v1382_v9, %s1288_s21  ;;  %915 = vrot.lane.b32.xlu0 %v1384_v10, %s1288_s21 }
  0x6c   :  { %921 = vrot.lane.b32.xlu1 %v1384_v10, %s1289_s22  ;;  %919 = vrot.lane.b32.xlu0 %v1390_v11, %s1288_s21 }
  0x70   :  { %925 = vrot.lane.b32.xlu1 %v1390_v11, %s1289_s22  ;;  %923 = vrot.lane.b32.xlu0 %v1382_v9, %s1289_s22 }
  0x86   :  { %v31_v46 = vpop.permute.xlu1 %30  ;;  %v27_v47 = vpop.permute.xlu0 %26 }
  0x87   :  { %v1517_v52 = vadd.f32 %v31_v46, %v1316_v0  ;;  %v58_v53 = vmul.f32 %v31_v46, %v31_v46  ;;  %v112_v54 = vmul.f32 0.029048203, %v31_v46  ;;  %v163_v55 = vmul.f32 0.0051372214, %v31_v46 }
  0x88   :  { %v212_v56 = vmul.f32 0.023828054, %v31_v46  ;;  %v261_v57 = vmul.f32 -0.03553367, %v31_v46  ;;  %v1520_v58 = vadd.f32 %v27_v47, %v1318_v1  ;;  %v56_v59 = vmul.f32 %v27_v47, %v27_v47 }
  0x89   :  { %v1522_v60 = vadd.f32 %v58_v53, %v52_v26  ;;  %v1524_v61 = vadd.f32 %v112_v54, %v109_v12  ;;  %v1526_v62 = vadd.f32 %v163_v55, %v160_v13  ;;  %v91_v63 = vmul.f32 -0.03698562, %v27_v47 }
  0x8a   :  { %v1528_v51 = vadd.f32 %v212_v56, %v209_v14  ;;  %v1530_v0 = vadd.f32 %v261_v57, %v258_v15  ;;  %v1532_v50 = vadd.f32 %v56_v59, %v50_v30  ;;  %v110_v49 = vmul.f32 0.029048203, %v27_v47  ;;  %v322_v45 = vpop.permute.xlu1 %321  ;;  %v29_v14 = vpop.permute.xlu0 %28 }
  0x8b   :  { %v1534_v46 = vadd.f32 %v91_v63, %v89_v16  ;;  %v161_v1 = vmul.f32 0.0051372214, %v27_v47  ;;  %v210_v11 = vmul.f32 0.023828054, %v27_v47  ;;  %v259_v10 = vmul.f32 -0.03553367, %v27_v47 }
  0x8c   :  { %v1536_v26 = vadd.f32 %v110_v49, %v107_v17  ;;  %v1539_v12 = vadd.f32 %v322_v45, %v1324_v2  ;;  %v351_v13 = vmul.f32 %v322_v45, %v322_v45  ;;  %v386_v53 = vmul.f32 0.025648084, %v322_v45 }
  0x8d   :  { %v1541_v54 = vadd.f32 %v161_v1, %v158_v18  ;;  %v1543_v15 = vadd.f32 %v210_v11, %v207_v19  ;;  %v1545_v30 = vadd.f32 %v259_v10, %v256_v20  ;;  %v405_v55 = vmul.f32 -0.042693682, %v322_v45 }
  0x8e   :  { %v1547_v16 = vadd.f32 %v351_v13, %v345_v34  ;;  %v1549_v56 = vadd.f32 %v386_v53, %v384_v21  ;;  %v453_v47 = vmul.f32 -0.061478302, %v322_v45  ;;  %v501_v17 = vmul.f32 0.007809982, %v322_v45  ;;  %v326_v18 = vpop.permute.xlu1 %325 }
  0x8f   :  { %v1552_v49 = vadd.f32 %v405_v55, %v1435_v22  ;;  %v549_v2 = vmul.f32 0.019030191, %v322_v45  ;;  %v54_v57 = vadd.f32 %v29_v14, %v1326_v3  ;;  %v57_v59 = vmul.f32 %v29_v14, %v29_v14 }
  0x90   :  { %v1556_v11 = vadd.f32 %v453_v47, %v1438_v23  ;;  %v1559_v10 = vadd.f32 %v501_v17, %v1441_v24  ;;  %v92_v19 = vmul.f32 -0.03698562, %v29_v14  ;;  %v111_v20 = vmul.f32 0.029048203, %v29_v14  ;;  %v324_v23 = vpop.permute.xlu0 %323 }
  0x91   :  { %v1562_v21 = vadd.f32 %v549_v2, %v1444_v25  ;;  %v60_v34 = vadd.f32 %v57_v59, %v51_v38  ;;  %v162_v63 = vmul.f32 0.0051372214, %v29_v14  ;;  %v211_v22 = vmul.f32 0.023828054, %v29_v14 }
  0x92   :  { %v94_v45 = vadd.f32 %v92_v19, %v1449_v27  ;;  %v114_v3 = vadd.f32 %v111_v20, %v1452_v28  ;;  %v260_v1 = vmul.f32 -0.03553367, %v29_v14  ;;  %v1567_v13 = vadd.f32 %v326_v18, %v1332_v4 }
  0x93   :  { %v165_v24 = vadd.f32 %v162_v63, %v1455_v29  ;;  %v214_v53 = vadd.f32 %v211_v22, %v1460_v31  ;;  %v353_v55 = vmul.f32 %v326_v18, %v326_v18  ;;  %v407_v47 = vmul.f32 -0.042693682, %v326_v18  ;;  %v35_v29 = vpop.permute.xlu1 %34 }
  0x94   :  { %v263_v25 = vadd.f32 %v260_v1, %v1463_v32  ;;  %v455_v38 = vmul.f32 -0.061478302, %v326_v18  ;;  %v503_v17 = vmul.f32 0.007809982, %v326_v18  ;;  %v551_v2 = vmul.f32 0.019030191, %v326_v18  ;;  %v33_v1 = vpop.permute.xlu0 %32 }
  0x95   :  { %v1573_v27 = vadd.f32 %v353_v55, %v1492_v42  ;;  %v1576_v28 = vadd.f32 %v407_v47, %v1466_v33  ;;  %v1579_v4 = vadd.f32 %v324_v23, %v1334_v5  ;;  %v352_v14 = vmul.f32 %v324_v23, %v324_v23 }
  0x96   :  { %v1582_v31 = vadd.f32 %v455_v38, %v1471_v35  ;;  %v1585_v59 = vadd.f32 %v503_v17, %v1474_v36  ;;  %v1588_v32 = vadd.f32 %v551_v2, %v1477_v37  ;;  %v387_v18 = vmul.f32 0.025648084, %v324_v23 }
  0x97   :  { %v1591_v42 = vadd.f32 %v352_v14, %v1505_v48  ;;  %v406_v33 = vmul.f32 -0.042693682, %v324_v23  ;;  %v454_v19 = vmul.f32 -0.061478302, %v324_v23  ;;  %v502_v20 = vmul.f32 0.007809982, %v324_v23 }
  0x98   :  { %v1594_v5 = vadd.f32 %v387_v18, %v1482_v39  ;;  %v550_v63 = vmul.f32 0.019030191, %v324_v23  ;;  %v1596_v22 = vadd.f32 %v54_v57, %v35_v29  ;;  %v66_v35 = vmul.f32 %v35_v29, %v35_v29 }
  0x99   :  { %v1599_v36 = vadd.f32 %v406_v33, %v1485_v40  ;;  %v1602_v37 = vadd.f32 %v454_v19, %v1488_v41  ;;  %v1605_v48 = vadd.f32 %v502_v20, %v1495_v43  ;;  %v96_v55 = vmul.f32 -0.03057916, %v35_v29  ;;  %v328_v33 = vpop.permute.xlu1 %327 }
  0x9a   :  { %3364 = vst [vmem:[#allocation15_spill] sm:$0xff] %v1596_v22  ;;  %v1608_v47 = vadd.f32 %v550_v63, %v1498_v44  ;;  %v1610_v39 = vadd.f32 %v66_v35, %v60_v34  ;;  %v117_v23 = vmul.f32 -0.04181627, %v35_v29  ;;  %v168_v57 = vmul.f32 -0.046978258, %v35_v29  ;;  %v37_v35 = vpop.permute.xlu0 %36 }
  0x9b   :  { %v1612_v38 = vadd.f32 %v96_v55, %v94_v45  ;;  %v217_v17 = vmul.f32 -0.019426778, %v35_v29  ;;  %v266_v2 = vmul.f32 0.030443918, %v35_v29  ;;  %v1615_v40 = vadd.f32 %v1520_v58, %v33_v1 }
  0x9c   :  { %3365 = vst [vmem:[#allocation16_spill] sm:$0xff] %v1610_v39  ;;  %v1617_v41 = vadd.f32 %v117_v23, %v114_v3  ;;  %v1619_v14 = vadd.f32 %v168_v57, %v165_v24  ;;  %v65_v43 = vmul.f32 %v33_v1, %v33_v1  ;;  %v95_v18 = vmul.f32 -0.03057916, %v33_v1 }
  0x9d   :  { %v1621_v44 = vadd.f32 %v217_v17, %v214_v53  ;;  %v1623_v34 = vadd.f32 %v266_v2, %v263_v25  ;;  %v116_v19 = vmul.f32 -0.04181627, %v33_v1  ;;  %v167_v20 = vmul.f32 -0.046978258, %v33_v1 }
  0x9e   :  { %v1626_v45 = vadd.f32 %v65_v43, %v1532_v50  ;;  %v1629_v29 = vadd.f32 %v95_v18, %v1534_v46  ;;  %v216_v58 = vmul.f32 -0.019426778, %v33_v1  ;;  %v265_v3 = vmul.f32 0.030443918, %v33_v1 }
  0x9f   :  { %v1632_v24 = vadd.f32 %v116_v19, %v1536_v26  ;;  %v1635_v63 = vadd.f32 %v167_v20, %v1541_v54  ;;  %v1638_v53 = vadd.f32 %v1539_v12, %v328_v33  ;;  %v360_v25 = vmul.f32 %v328_v33, %v328_v33 }
  0xa0   :  { %v1641_v55 = vadd.f32 %v216_v58, %v1543_v15  ;;  %v1644_v50 = vadd.f32 %v265_v3, %v1545_v30  ;;  %v390_v46 = vmul.f32 0.0507388, %v328_v33  ;;  %v411_v23 = vmul.f32 -0.023320444, %v328_v33  ;;  %v332_v30 = vpop.permute.xlu1 %331 }
  0xa1   :  { %3366 = vst [vmem:[#allocation17_spill] sm:$0xff] %v1638_v53  ;;  %v1647_v1 = vadd.f32 %v360_v25, %v1547_v16  ;;  %v459_v26 = vmul.f32 -0.031034393, %v328_v33  ;;  %v507_v57 = vmul.f32 -0.0017342564, %v328_v33  ;;  %v1656_v15 = vadd.f32 %v1517_v52, %v37_v35 }
  0xa2   :  { %v555_v54 = vmul.f32 -0.01505042, %v328_v33  ;;  %v1650_v17 = vadd.f32 %v390_v46, %v1549_v56  ;;  %v1653_v12 = vadd.f32 %v411_v23, %v1552_v49  ;;  %v67_v2 = vmul.f32 %v37_v35, %v37_v35 }
  0xa3   :  { %3367 = vst [vmem:[#allocation18_spill] sm:$0xff] %v1647_v1  ;;  %v1659_v43 = vadd.f32 %v459_v26, %v1556_v11  ;;  %v1662_v16 = vadd.f32 %v507_v57, %v1559_v10  ;;  %v118_v33 = vmul.f32 -0.04181627, %v37_v35  ;;  %v169_v49 = vmul.f32 -0.046978258, %v37_v35  ;;  %v330_v10 = vpop.permute.xlu0 %329 }
  0xa4   :  { %v1665_v18 = vadd.f32 %v555_v54, %v1562_v21  ;;  %v1668_v56 = vadd.f32 %v67_v2, %v1522_v60  ;;  %v218_v19 = vmul.f32 -0.019426778, %v37_v35  ;;  %v267_v20 = vmul.f32 0.030443918, %v37_v35 }
  0xa5   :  { %v1671_v52 = vadd.f32 %v118_v33, %v1524_v61  ;;  %v1674_v58 = vadd.f32 %v1567_v13, %v332_v30  ;;  %v362_v11 = vmul.f32 %v332_v30, %v332_v30  ;;  %v413_v3 = vmul.f32 -0.023320444, %v332_v30 }
  0xa6   :  { %3368 = vst [vmem:[#allocation19_spill] sm:$0xff] %v1668_v56  ;;  %v1677_v25 = vadd.f32 %v169_v49, %v1526_v62  ;;  %v1680_v21 = vadd.f32 %v218_v19, %v1528_v51  ;;  %v1683_v60 = vadd.f32 %v267_v20, %v1530_v0  ;;  %v461_v46 = vmul.f32 -0.031034393, %v332_v30 }
  0xa7   :  { %3369 = vst [vmem:[#allocation20_spill] sm:$0xff] %v1674_v58  ;;  %v1686_v35 = vadd.f32 %v362_v11, %v1573_v27  ;;  %v1689_v61 = vadd.f32 %v413_v3, %v1576_v28  ;;  %v509_v13 = vmul.f32 -0.0017342564, %v332_v30  ;;  %v557_v23 = vmul.f32 -0.01505042, %v332_v30  ;;  %v615_v28 = vpop.permute.xlu1 %614 }
  0xa8   :  { %v1692_v26 = vadd.f32 %v461_v46, %v1582_v31  ;;  %v1695_v62 = vadd.f32 %v1579_v4, %v330_v10  ;;  %v361_v51 = vmul.f32 %v330_v10, %v330_v10  ;;  %v391_v57 = vmul.f32 0.0507388, %v330_v10 }
  0xa9   :  { %3370 = vst [vmem:[#allocation21_spill] sm:$0xff] %v1686_v35  ;;  %3371 = vst [vmem:[#allocation22_spill] sm:$0xff] %v1689_v61  ;;  %v1698_v0 = vadd.f32 %v509_v13, %v1585_v59  ;;  %v1701_v54 = vadd.f32 %v557_v23, %v1588_v32  ;;  %v412_v27 = vmul.f32 -0.023320444, %v330_v10  ;;  %v460_v2 = vmul.f32 -0.031034393, %v330_v10 }
  0xaa   :  { %3372 = vst [vmem:[#allocation23_spill] sm:$0xff] %v1692_v26  ;;  %3373 = vst [vmem:[#allocation24_spill] sm:$0xff] %v1695_v62  ;;  %v1704_v33 = vadd.f32 %v361_v51, %v1591_v42  ;;  %v1707_v31 = vadd.f32 %v391_v57, %v1594_v5  ;;  %v508_v30 = vmul.f32 -0.0017342564, %v330_v10  ;;  %v556_v4 = vmul.f32 -0.01505042, %v330_v10 }
  0xab   :  { %v1710_v49 = vadd.f32 %v412_v27, %v1599_v36  ;;  %v1713_v59 = vadd.f32 %v460_v2, %v1602_v37  ;;  %v1716_v32 = vmul.f32 -0.040746473, %v1352_v6  ;;  %v1719_v19 = vmul.f32 -0.05718292, %v1354_v7  ;;  %v1733_v37 = vpop.permute.xlu0 %612  ;;  %v1759_v51 = vpop.permute.xlu1 %38  ;;  %v3382_v35 = vld [vmem:[#allocation9_spill] sm:$0xff] }
  0xac   :  { %3374 = vst [vmem:[#allocation25_spill] sm:$0xff] %v1704_v33  ;;  %v1722_v42 = vadd.f32 %v508_v30, %v1605_v48  ;;  %v1725_v5 = vadd.f32 %v556_v4, %v1608_v47  ;;  %v1728_v20 = vmul.f32 -0.025764199, %v1354_v7  ;;  %v1731_v36 = vmul.f32 0.023592029, %v1354_v7 }
  0xad   :  { %v637_v11 = vmul.f32 %v1352_v6, %v1352_v6  ;;  %v1738_v3 = vmul.f32 -0.02405475, %v1354_v7  ;;  %v1741_v48 = vmul.f32 -0.040746473, %v1354_v7  ;;  %v1744_v47 = vmul.f32 -0.025764199, %v1360_v8 }
  0xae   :  { %v1748_v10 = vmul.f32 %v1354_v7, %v1354_v7  ;;  %v1751_v46 = vmul.f32 0.023592029, %v1360_v8  ;;  %v1754_v13 = vmul.f32 -0.02405475, %v1360_v8  ;;  %v1757_v23 = vmul.f32 -0.040746473, %v1360_v8 }
  0xaf   :  { %v1763_v57 = vmul.f32 %v1360_v8, %v1360_v8  ;;  %v1766_v27 = vmul.f32 0.009671685, %v1382_v9  ;;  %v1769_v2 = vmul.f32 -0.032914534, %v1382_v9  ;;  %v1772_v30 = vmul.f32 0.060912415, %v1382_v9  ;;  %v1826_v22 = vpop.permute.xlu1 %42 }
  0xb0   :  { %3375 = vst [vmem:[#allocation26_spill] sm:$0xff] %v1757_v23  ;;  %v1776_v4 = vmul.f32 %v1382_v9, %v1382_v9  ;;  %v1779_v26 = vmul.f32 -0.03839583, %v1382_v9  ;;  %v1782_v61 = vmul.f32 -0.023078334, %v1382_v9  ;;  %v1801_v9 = vpop.permute.xlu0 %616 }
  0xb1   :  { %3376 = vst [vmem:[#allocation27_spill] sm:$0xff] %v1766_v27  ;;  %3377 = vst [vmem:[#allocation28_spill] sm:$0xff] %v1769_v2  ;;  %v1785_v58 = vmul.f32 0.009671685, %v3382_v35  ;;  %v1789_v27 = vmul.f32 %v3382_v35, %v3382_v35  ;;  %v1792_v2 = vmul.f32 -0.032914534, %v3382_v35 }
  0xb2   :  { %3378 = vst [vmem:[#allocation29_spill] sm:$0xff] %v1772_v30  ;;  %3379 = vst [vmem:[#allocation30_spill] sm:$0xff] %v1776_v4  ;;  %v1795_v30 = vmul.f32 0.060912415, %v3382_v35  ;;  %v1798_v4 = vmul.f32 -0.03839583, %v3382_v35 }
  0xb3   :  { %3380 = vst [vmem:[#allocation31_spill] sm:$0xff] %v1779_v26  ;;  %3381 = vst [vmem:[#allocation32_spill] sm:$0xff] %v1782_v61  ;;  %v99_v26 = vmul.f32 -0.047720622, %v1759_v51  ;;  %v1804_v61 = vmul.f32 -0.023078334, %v3382_v35 }
  0xb4   :  { %3383 = vst [vmem:[#allocation33_spill] sm:$0xff] %v1785_v58  ;;  %3384 = vst [vmem:[#allocation34_spill] sm:$0xff] %v1789_v27  ;;  %v3389_v58 = vld [vmem:[#allocation10_spill] sm:$0xff]  ;;  %v173_v53 = vmul.f32 0.00941816, %v1759_v51 }
  0xb5   :  { %3385 = vst [vmem:[#allocation35_spill] sm:$0xff] %v1792_v2  ;;  %3386 = vst [vmem:[#allocation36_spill] sm:$0xff] %v1795_v30  ;;  %v1808_v1 = vmul.f32 %v3389_v58, %v3389_v58  ;;  %v1811_v27 = vmul.f32 -0.032914534, %v3389_v58  ;;  %v643_v2 = vmul.f32 %v615_v28, %v615_v28  ;;  %v122_v30 = vmul.f32 0.06702957, %v1759_v51 }
  0xb6   :  { %3387 = vst [vmem:[#allocation37_spill] sm:$0xff] %v1798_v4  ;;  %3388 = vst [vmem:[#allocation38_spill] sm:$0xff] %v1804_v61  ;;  %v137_v4 = vlaneseq  ;;  %v678_v33 = vmul.f32 0.054390203, %v615_v28  ;;  %v1816_v62 = vadd.f32 %v99_v26, %v1629_v29  ;;  %v222_v35 = vmul.f32 0.0368133, %v1759_v51 }
  0xb7   :  { %3390 = vst [vmem:[#allocation39_spill] sm:$0xff] %v1808_v1  ;;  %3391 = vst [vmem:[#allocation40_spill] sm:$0xff] %v1811_v27  ;;  %v271_v61 = vmul.f32 0.04277627, %v1759_v51  ;;  %v697_v39 = vmul.f32 0.034002066, %v615_v28  ;;  %v1821_v1 = vadd.f32 %v122_v30, %v1632_v24  ;;  %v1824_v27 = vadd.f32 %v173_v53, %v1635_v63 }
  0xb8   :  { %3392 = vst [vmem:[#allocation41_spill] sm:$0xff] %v1816_v62  ;;  %v1829_v56 = vmul.f32 0.060912415, %v3389_v58  ;;  %v745_v23 = vmul.f32 0.009753165, %v615_v28  ;;  %v1832_v29 = vadd.f32 %v222_v35, %v1641_v55  ;;  %v1841_v24 = vadd.f32 %v615_v28, %v1352_v6 }
  0xb9   :  { %3393 = vst [vmem:[#allocation42_spill] sm:$0xff] %v1821_v1  ;;  %3394 = vst [vmem:[#allocation43_spill] sm:$0xff] %v1824_v27  ;;  %v1835_v26 = vadd.f32 %v271_v61, %v1644_v50  ;;  %v1838_v62 = vmul.f32 -0.03839583, %v3389_v58  ;;  %v1843_v63 = vadd.f32 %v643_v2, %v637_v11  ;;  %v1846_v53 = vmul.f32 -0.023078334, %v3389_v58  ;;  %v1854_v61 = vpop.permute.xlu0 %40 }
  0xba   :  { %3395 = vst [vmem:[#allocation44_spill] sm:$0xff] %v1829_v56  ;;  %3396 = vst [vmem:[#allocation45_spill] sm:$0xff] %v1832_v29  ;;  %v1848_v30 = vshrl.u32 %v137_v4, 7  ;;  %v3400_v56 = vld [vmem:[#allocation11_spill] sm:$0xff]  ;;  %v793_v55 = vmul.f32 -0.008133168, %v615_v28 }
  0xbb   :  { %3397 = vst [vmem:[#allocation46_spill] sm:$0xff] %v1835_v26  ;;  %3398 = vst [vmem:[#allocation47_spill] sm:$0xff] %v1838_v62  ;;  %v1851_v27 = vadd.f32 %v678_v33, %v3400_v56  ;;  %v841_v35 = vmul.f32 -0.047771096, %v615_v28  ;;  %v124_v50 = vmul.f32 0.06702957, %v1826_v22  ;;  %v1867_v56 = vadd.f32 %v1733_v37, %v1354_v7 }
  0xbc   :  { %3399 = vst [vmem:[#allocation48_spill] sm:$0xff] %v1846_v53  ;;  %v3401_v62 = vld [vmem:[#allocation12_spill] sm:$0xff]  ;;  %v175_v6 = vmul.f32 0.00941816, %v1826_v22  ;;  %v224_v11 = vmul.f32 0.0368133, %v1826_v22  ;;  %v642_v28 = vmul.f32 %v1733_v37, %v1733_v37 }
  0xbd   :  { %v1857_v26 = vadd.f32 %v697_v39, %v3401_v62  ;;  %v273_v2 = vmul.f32 0.04277627, %v1826_v22  ;;  %v3402_v4 = vld [vmem:[#allocation13_spill] sm:$0xff]  ;;  %v1872_v33 = vadd.f32 %v124_v50, %v1671_v52  ;;  %v3404_v7 = vld [vmem:[#allocation14_spill] sm:$0xff]  ;;  %v123_v1 = vmul.f32 0.06702957, %v1854_v61 }
  0xbe   :  { %v1863_v53 = vadd.f32 %v745_v23, %v3402_v4  ;;  %v1875_v39 = vadd.f32 %v175_v6, %v1677_v25  ;;  %v1878_v62 = vadd.f32 %v224_v11, %v1680_v21  ;;  %v100_v23 = vmul.f32 -0.047720622, %v1854_v61  ;;  %v1884_v4 = vpop.permute.xlu1 %335 }
  0xbf   :  { %v1881_v58 = vadd.f32 %v273_v2, %v1683_v60  ;;  %v1887_v29 = vadd.f32 %v793_v55, %v3404_v7  ;;  %v174_v52 = vmul.f32 0.00941816, %v1854_v61  ;;  %v223_v25 = vmul.f32 0.0368133, %v1854_v61 }
  0xc0   :  { %v1893_v50 = vadd.f32 %v841_v35, %v1716_v32  ;;  %v677_v21 = vmul.f32 0.054390203, %v1733_v37  ;;  %v1897_v60 = vadd.f32 %v100_v23, %v1612_v38  ;;  %v272_v6 = vmul.f32 0.04277627, %v1854_v61  ;;  %v1910_v32 = vpop.permute.xlu0 %333 }
  0xc1   :  { %3403 = vst [vmem:[#allocation11_spill] sm:$0xff] %v1881_v58  ;;  %v1901_v11 = vadd.f32 %v123_v1, %v1617_v41  ;;  %v1904_v55 = vadd.f32 %v174_v52, %v1619_v14  ;;  %v1907_v2 = vadd.f32 %v223_v25, %v1621_v44  ;;  %v395_v7 = vmul.f32 -0.08720424, %v1884_v4 }
  0xc2   :  { %v744_v35 = vmul.f32 0.009753165, %v1733_v37  ;;  %v1914_v38 = vadd.f32 %v272_v6, %v1623_v34  ;;  %v418_v23 = vmul.f32 0.06736633, %v1884_v4  ;;  %v466_v41 = vmul.f32 -0.08212612, %v1884_v4 }
  0xc3   :  { %3405 = vst [vmem:[#allocation12_spill] sm:$0xff] %v1904_v55  ;;  %3406 = vst [vmem:[#allocation13_spill] sm:$0xff] %v1907_v2  ;;  %v792_v1 = vmul.f32 -0.008133168, %v1733_v37  ;;  %v1920_v14 = vadd.f32 %v395_v7, %v1707_v31  ;;  %v514_v44 = vmul.f32 0.034218747, %v1884_v4  ;;  %v619_v55 = vpop.permute.xlu1 %618 }
  0xc4   :  { %3407 = vst [vmem:[#allocation14_spill] sm:$0xff] %v1914_v38  ;;  %v562_v52 = vmul.f32 0.012504798, %v1884_v4  ;;  %v840_v25 = vmul.f32 -0.047771096, %v1733_v37  ;;  %v1926_v2 = vadd.f32 %v418_v23, %v1710_v49  ;;  %v1929_v34 = vadd.f32 %v466_v41, %v1713_v59 }
  0xc5   :  { %3408 = vst [vmem:[#allocation49_spill] sm:$0xff] %v1920_v14  ;;  %v394_v6 = vmul.f32 -0.08720424, %v1910_v32  ;;  %v1933_v38 = vadd.f32 %v514_v44, %v1722_v42  ;;  %v417_v7 = vmul.f32 0.06736633, %v1910_v32  ;;  %v679_v42 = vadd.f32 %v677_v21, %v1719_v19 }
  0xc6   :  { %v1936_v31 = vadd.f32 %v562_v52, %v1725_v5  ;;  %v465_v14 = vmul.f32 -0.08212612, %v1910_v32  ;;  %v696_v58 = vmul.f32 0.034002066, %v1733_v37  ;;  %v513_v59 = vmul.f32 0.034218747, %v1910_v32 }
  0xc7   :  { %v1942_v49 = vadd.f32 %v394_v6, %v1650_v17  ;;  %v561_v23 = vmul.f32 0.012504798, %v1910_v32  ;;  %v747_v41 = vadd.f32 %v744_v35, %v1731_v36  ;;  %v1949_v5 = vadd.f32 %v417_v7, %v1653_v12  ;;  %v338_v35 = vpop.permute.xlu0 %337 }
  0xc8   :  { %3409 = vst [vmem:[#allocation50_spill] sm:$0xff] %v1936_v31  ;;  %v1952_v44 = vadd.f32 %v465_v14, %v1659_v43  ;;  %v795_v52 = vadd.f32 %v792_v1, %v1738_v3  ;;  %v1956_v37 = vadd.f32 %v513_v59, %v1662_v16  ;;  %v681_v6 = vmul.f32 0.023032153, %v619_v55 }
  0xc9   :  { %v1959_v17 = vadd.f32 %v561_v23, %v1665_v18  ;;  %v843_v31 = vadd.f32 %v840_v25, %v1741_v48  ;;  %v750_v19 = vmul.f32 -0.021215314, %v619_v55  ;;  %v798_v21 = vmul.f32 0.06950122, %v619_v55 }
  0xca   :  { %v846_v36 = vmul.f32 9.564643e-05, %v619_v55  ;;  %v74_v12 = vmul.f32 %v1759_v51, %v1759_v51  ;;  %v644_v43 = vmul.f32 %v1801_v9, %v1801_v9  ;;  %v698_v3 = vmul.f32 0.034002066, %v1801_v9 }
  0xcb   :  { %3410 = vst [vmem:[#allocation51_spill] sm:$0xff] %v1959_v17  ;;  %v1967_v16 = vadd.f32 %v681_v6, %v679_v42  ;;  %v746_v18 = vmul.f32 0.009753165, %v1801_v9  ;;  %v1970_v1 = vadd.f32 %v750_v19, %v747_v41  ;;  %v1972_v14 = vadd.f32 %v798_v21, %v795_v52  ;;  %v623_v52 = vpop.permute.xlu1 %622 }
  0xcc   :  { %v1974_v48 = vadd.f32 %v846_v36, %v843_v31  ;;  %v645_v25 = vadd.f32 %v642_v28, %v1748_v10  ;;  %v794_v7 = vmul.f32 -0.008133168, %v1801_v9  ;;  %v515_v59 = vmul.f32 0.034218747, %v338_v35  ;;  %v3417_v36 = vld [vmem:[#allocation26_spill] sm:$0xff] }
  0xcd   :  { %3411 = vst [vmem:[#allocation52_spill] sm:$0xff] %v1967_v16  ;;  %3412 = vst [vmem:[#allocation53_spill] sm:$0xff] %v1970_v1  ;;  %v563_v23 = vmul.f32 0.012504798, %v338_v35  ;;  %v699_v17 = vadd.f32 %v696_v58, %v1728_v20  ;;  %v1981_v42 = vadd.f32 %v1615_v40, %v1759_v51  ;;  %v842_v6 = vmul.f32 -0.047771096, %v1801_v9 }
  0xce   :  { %3413 = vst [vmem:[#allocation54_spill] sm:$0xff] %v1972_v14  ;;  %3414 = vst [vmem:[#allocation55_spill] sm:$0xff] %v1974_v48  ;;  %v76_v41 = vmul.f32 %v1826_v22, %v1826_v22  ;;  %v1987_v31 = vadd.f32 %v74_v12, %v1626_v45  ;;  %v75_v10 = vmul.f32 %v1854_v61, %v1854_v61  ;;  %v702_v12 = vmul.f32 -0.03178808, %v619_v55  ;;  %v3430_v16 = vld [vmem:[#allocation22_spill] sm:$0xff] }
  0xcf   :  { %v1992_v28 = vadd.f32 %v515_v59, %v1698_v0  ;;  %v1995_v58 = vadd.f32 %v563_v23, %v1701_v54  ;;  %v641_v40 = vadd.f32 %v1801_v9, %v1360_v8  ;;  %v647_v20 = vadd.f32 %v644_v43, %v1763_v57  ;;  %v3418_v9 = vld [vmem:[#allocation19_spill] sm:$0xff]  ;;  %v3422_v59 = vld [vmem:[#allocation25_spill] sm:$0xff] }
  0xd0   :  { %v701_v51 = vadd.f32 %v698_v3, %v1744_v47  ;;  %v370_v45 = vmul.f32 %v1884_v4, %v1884_v4  ;;  %v749_v19 = vadd.f32 %v746_v18, %v1751_v46  ;;  %v797_v21 = vadd.f32 %v794_v7, %v1754_v13  ;;  %v3419_v43 = vld [vmem:[#allocation15_spill] sm:$0xff]  ;;  %v3420_v46 = vld [vmem:[#allocation16_spill] sm:$0xff] }
  0xd1   :  { %3415 = vst [vmem:[#allocation56_spill] sm:$0xff] %v1992_v28  ;;  %3416 = vst [vmem:[#allocation57_spill] sm:$0xff] %v1995_v58  ;;  %v2007_v0 = vadd.f32 %v1656_v15, %v1826_v22  ;;  %v369_v54 = vmul.f32 %v1910_v32, %v1910_v32  ;;  %v845_v8 = vadd.f32 %v842_v6, %v3417_v36  ;;  %v419_v22 = vmul.f32 0.06736633, %v338_v35  ;;  %v3421_v15 = vld [vmem:[#allocation24_spill] sm:$0xff]  ;;  %v3423_v6 = vld [vmem:[#allocation17_spill] sm:$0xff] }
  0xd2   :  { %v2013_v57 = vadd.f32 %v76_v41, %v3418_v9  ;;  %v651_v47 = vmul.f32 %v619_v55, %v619_v55  ;;  %v2017_v3 = vadd.f32 %v3419_v43, %v1854_v61  ;;  %v2020_v13 = vadd.f32 %v75_v10, %v3420_v46  ;;  %v621_v9 = vpop.permute.xlu0 %620  ;;  %v906_v61 = vpop.permute.xlu1 %905  ;;  %v3424_v43 = vld [vmem:[#allocation18_spill] sm:$0xff] }
  0xd3   :  { %v371_v18 = vmul.f32 %v338_v35, %v338_v35  ;;  %v2024_v7 = vadd.f32 %v3421_v15, %v1884_v4  ;;  %v2027_v23 = vadd.f32 %v370_v45, %v3422_v59  ;;  %v2031_v41 = vadd.f32 %v3423_v6, %v1910_v32  ;;  %v3428_v45 = vld [vmem:[#allocation20_spill] sm:$0xff]  ;;  %v3429_v6 = vld [vmem:[#allocation21_spill] sm:$0xff] }
  0xd4   :  { %v467_v36 = vmul.f32 -0.08212612, %v338_v35  ;;  %v2034_v48 = vadd.f32 %v369_v54, %v3424_v43  ;;  %v2037_v10 = vadd.f32 %v1867_v56, %v619_v55  ;;  %v653_v46 = vmul.f32 %v623_v52, %v623_v52  ;;  %v3431_v56 = vld [vmem:[#allocation23_spill] sm:$0xff] }
  0xd5   :  { %v704_v14 = vmul.f32 -0.03178808, %v623_v52  ;;  %v2039_v4 = vadd.f32 %v651_v47, %v645_v25  ;;  %v2041_v15 = vadd.f32 %v702_v12, %v699_v17  ;;  %v2044_v59 = vadd.f32 %v3428_v45, %v338_v35 }
  0xd6   :  { %3425 = vst [vmem:[#allocation26_spill] sm:$0xff] %v2037_v10  ;;  %v752_v32 = vmul.f32 -0.021215314, %v623_v52  ;;  %v2047_v1 = vadd.f32 %v371_v18, %v3429_v6  ;;  %v2050_v58 = vadd.f32 %v419_v22, %v3430_v16  ;;  %v800_v54 = vmul.f32 0.06950122, %v623_v52 }
  0xd7   :  { %3426 = vst [vmem:[#allocation19_spill] sm:$0xff] %v2039_v4  ;;  %3427 = vst [vmem:[#allocation15_spill] sm:$0xff] %v2041_v15  ;;  %v848_v43 = vmul.f32 9.564643e-05, %v623_v52  ;;  %v2053_v55 = vadd.f32 %v467_v36, %v3431_v56  ;;  %v2055_v10 = vadd.f32 %v641_v40, %v623_v52  ;;  %v652_v25 = vmul.f32 %v621_v9, %v621_v9  ;;  %v904_v15 = vpop.permute.xlu0 %903  ;;  %v45_v4 = vpop.permute.xlu1 %44  ;;  %v3436_v56 = vld [vmem:[#allocation27_spill] sm:$0xff] }
  0xd8   :  { %v682_v17 = vmul.f32 0.023032153, %v621_v9  ;;  %v2057_v47 = vadd.f32 %v653_v46, %v647_v20  ;;  %v2059_v35 = vadd.f32 %v704_v14, %v701_v51  ;;  %v703_v12 = vmul.f32 -0.03178808, %v621_v9 }
  0xd9   :  { %v751_v45 = vmul.f32 -0.021215314, %v621_v9  ;;  %v2061_v18 = vadd.f32 %v752_v32, %v749_v19  ;;  %v799_v6 = vmul.f32 0.06950122, %v621_v9  ;;  %v847_v16 = vmul.f32 9.564643e-05, %v621_v9 }
  0xda   :  { %v934_v22 = vmul.f32 %v906_v61, %v906_v61  ;;  %v2063_v28 = vadd.f32 %v800_v54, %v797_v21  ;;  %v2065_v36 = vadd.f32 %v848_v43, %v845_v8  ;;  %v2068_v52 = vadd.f32 %v1841_v24, %v621_v9  ;;  %v3432_v8 = vld [vmem:[#allocation8_spill] sm:$0xff] }
  0xdb   :  { %v969_v40 = vmul.f32 0.011039522, %v906_v61  ;;  %v2071_v14 = vadd.f32 %v652_v25, %v1843_v63  ;;  %v2074_v20 = vadd.f32 %v682_v17, %v1851_v27  ;;  %v988_v51 = vmul.f32 0.04626839, %v906_v61  ;;  %v3434_v27 = vld [vmem:[#allocation30_spill] sm:$0xff] }
  0xdc   :  { %v1036_v19 = vmul.f32 -0.022060335, %v906_v61  ;;  %v2077_v46 = vadd.f32 %v703_v12, %v1857_v26  ;;  %v2080_v21 = vadd.f32 %v751_v45, %v1863_v53  ;;  %v2083_v32 = vadd.f32 %v906_v61, %v3432_v8  ;;  %v3438_v12 = vld [vmem:[#allocation28_spill] sm:$0xff]  ;;  %v3440_v8 = vld [vmem:[#allocation29_spill] sm:$0xff] }
  0xdd   :  { %v1084_v24 = vmul.f32 0.034730762, %v906_v61  ;;  %v2086_v9 = vadd.f32 %v799_v6, %v1887_v29  ;;  %v2089_v63 = vadd.f32 %v847_v16, %v1893_v50  ;;  %v2092_v54 = vadd.f32 %v934_v22, %v3434_v27  ;;  %v3442_v29 = vld [vmem:[#allocation9_spill] sm:$0xff]  ;;  %v2106_v16 = vpop.permute.xlu0 %907  ;;  %v2108_v22 = vpop.permute.xlu1 %48 }
  0xde   :  { %3433 = vst [vmem:[#allocation16_spill] sm:$0xff] %v2083_v32  ;;  %v1132_v43 = vmul.f32 -0.06079457, %v906_v61  ;;  %v2095_v26 = vadd.f32 %v969_v40, %v3436_v56  ;;  %v933_v25 = vmul.f32 %v904_v15, %v904_v15  ;;  %v968_v53 = vmul.f32 0.011039522, %v904_v15  ;;  %v3444_v61 = vld [vmem:[#allocation31_spill] sm:$0xff] }
  0xdf   :  { %3435 = vst [vmem:[#allocation24_spill] sm:$0xff] %v2092_v54  ;;  %v83_v17 = vmul.f32 %v45_v4, %v45_v4  ;;  %v2098_v45 = vadd.f32 %v988_v51, %v3438_v12  ;;  %v2101_v32 = vadd.f32 %v1036_v19, %v3440_v8  ;;  %v2104_v6 = vadd.f32 %v904_v15, %v3442_v29  ;;  %v3446_v54 = vld [vmem:[#allocation32_spill] sm:$0xff]  ;;  %v3449_v29 = vld [vmem:[#allocation34_spill] sm:$0xff] }
  0xe0   :  { %3437 = vst [vmem:[#allocation25_spill] sm:$0xff] %v2095_v26  ;;  %v987_v50 = vmul.f32 0.04626839, %v904_v15  ;;  %v2111_v40 = vadd.f32 %v1084_v24, %v3444_v61  ;;  %v1035_v27 = vmul.f32 -0.022060335, %v904_v15  ;;  %v2114_v51 = vadd.f32 %v1132_v43, %v3446_v54 }
  0xe1   :  { %3439 = vst [vmem:[#allocation17_spill] sm:$0xff] %v2098_v45  ;;  %3441 = vst [vmem:[#allocation18_spill] sm:$0xff] %v2101_v32  ;;  %v1083_v56 = vmul.f32 0.034730762, %v904_v15  ;;  %v1131_v26 = vmul.f32 -0.06079457, %v904_v15  ;;  %v2117_v19 = vadd.f32 %v1981_v42, %v45_v4  ;;  %v2127_v24 = vadd.f32 %v83_v17, %v1987_v31 }
  0xe2   :  { %3443 = vst [vmem:[#allocation20_spill] sm:$0xff] %v2104_v6  ;;  %3445 = vst [vmem:[#allocation21_spill] sm:$0xff] %v2111_v40  ;;  %v103_v12 = vmul.f32 -0.03556372, %v45_v4  ;;  %v128_v8 = vmul.f32 -0.07687031, %v45_v4  ;;  %v2121_v6 = vadd.f32 %v933_v25, %v3449_v29  ;;  %v85_v15 = vmul.f32 %v2108_v22, %v2108_v22 }
  0xe3   :  { %3447 = vst [vmem:[#allocation22_spill] sm:$0xff] %v2114_v51  ;;  %3448 = vst [vmem:[#allocation23_spill] sm:$0xff] %v2117_v19  ;;  %vm139_vm0 = vcmp.lt.s32.totalorder %v1848_v30, 7  ;;  %v3451_v32 = vld [vmem:[#allocation33_spill] sm:$0xff]  ;;  %vm188_vm1 = vcmp.lt.s32.totalorder %v1848_v30, 6  ;;  %v3453_v42 = vld [vmem:[#allocation35_spill] sm:$0xff] }
  0xe4   :  { %3450 = vst [vmem:[#allocation8_spill] sm:$0xff] %v2121_v6  ;;  %v2124_v45 = vadd.f32 %v968_v53, %v3451_v32  ;;  %v2133_v54 = vadd.f32 %v987_v50, %v3453_v42  ;;  %v179_v43 = vmul.f32 0.07039875, %v45_v4  ;;  %v228_v61 = vmul.f32 0.014355996, %v45_v4  ;;  %v3455_v25 = vld [vmem:[#allocation36_spill] sm:$0xff] }
  0xe5   :  { %v130_v51 = vmul.f32 -0.07687031, %v2108_v22  ;;  %v2137_v29 = vadd.f32 %v1035_v27, %v3455_v25  ;;  %v3457_v32 = vld [vmem:[#allocation37_spill] sm:$0xff]  ;;  %v3459_v31 = vld [vmem:[#allocation38_spill] sm:$0xff]  ;;  %v144_v40 = vrot.slane %v2117_v19, 1  ;;  %v2157_v27 = vadd.f32 %v85_v15, %v2013_v57 }
  0xe6   :  { %3452 = vst [vmem:[#allocation30_spill] sm:$0xff] %v2124_v45  ;;  %3454 = vst [vmem:[#allocation27_spill] sm:$0xff] %v2133_v54  ;;  %v2140_v53 = vadd.f32 %v1083_v56, %v3457_v32  ;;  %v2143_v17 = vadd.f32 %v1131_v26, %v3459_v31  ;;  %v2147_v45 = vadd.f32 %v2007_v0, %v2108_v22  ;;  %v3462_v6 = vld [vmem:[#allocation41_spill] sm:$0xff]  ;;  %v3464_v42 = vld [vmem:[#allocation42_spill] sm:$0xff]  ;;  %v2159_v56 = vpop.permute.xlu0 %46  ;;  %v989_v26 = vmul.f32 0.04626839, %v2106_v16 }
  0xe7   :  { %3456 = vst [vmem:[#allocation28_spill] sm:$0xff] %v2137_v29  ;;  %v2150_v50 = vadd.f32 %v103_v12, %v3462_v6  ;;  %v2153_v54 = vadd.f32 %v128_v8, %v3464_v42  ;;  %3466 = vst [vmem:[#allocation33_spill] sm:$0xff] %v2157_v27  ;;  %v3467_v6 = vld [vmem:[#allocation43_spill] sm:$0xff]  ;;  %v3468_v8 = vld [vmem:[#allocation45_spill] sm:$0xff]  ;;  %v277_v42 = vmul.f32 0.036518384, %v45_v4  ;;  %v133_v57 = vadd.f32 %v130_v51, %v1872_v33 }
  0xe8   :  { %3458 = vst [vmem:[#allocation29_spill] sm:$0xff] %v2140_v53  ;;  %3460 = vst [vmem:[#allocation9_spill] sm:$0xff] %v2143_v17  ;;  %v2166_v12 = vadd.f32 %v179_v43, %v3467_v6  ;;  %v2169_v31 = vadd.f32 %v228_v61, %v3468_v8  ;;  %v2176_v25 = vadd.f32 %v2017_v3, %v2159_v56  ;;  %v153_v6 = vrot.slane %v2157_v27, 1  ;;  %v3471_v15 = vld [vmem:[#allocation46_spill] sm:$0xff] }
  0xe9   :  { %3461 = vst [vmem:[#allocation31_spill] sm:$0xff] %v2147_v45  ;;  %3463 = vst [vmem:[#allocation32_spill] sm:$0xff] %v2150_v50  ;;  %v146_v50 = vrot.slane %v2147_v45, 1  ;;  %v84_v32 = vmul.f32 %v2159_v56, %v2159_v56  ;;  %v195_v61 = vrot.slane %v2147_v45, 2  ;;  %v129_v4 = vmul.f32 -0.07687031, %v2159_v56 }
  0xea   :  { %3465 = vst [vmem:[#allocation34_spill] sm:$0xff] %v2153_v54  ;;  %3469 = vst [vmem:[#allocation35_spill] sm:$0xff] %v2169_v31  ;;  %v104_v51 = vmul.f32 -0.03556372, %v2159_v56  ;;  %v145_v8 = vrot.slane %v2176_v25, 1  ;;  %v2191_v0 = vadd.f32 %v277_v42, %v3471_v15  ;;  %v136_v43 = vrot.slane %v133_v57, 1 }
  0xeb   :  { %3470 = vst [vmem:[#allocation36_spill] sm:$0xff] %v2176_v25  ;;  %v2185_v33 = vadd.f32 %v84_v32, %v2020_v13  ;;  %v2195_v54 = vadd.f32 %v129_v4, %v1901_v11  ;;  %v935_v17 = vmul.f32 %v2106_v16, %v2106_v16  ;;  %v181_v42 = vmul.f32 0.07039875, %v2108_v22  ;;  %v3478_v53 = vld [vmem:[#allocation10_spill] sm:$0xff] }
  0xec   :  { %3472 = vst [vmem:[#allocation37_spill] sm:$0xff] %v2191_v0  ;;  %v147_v13 = vsel %vm139_vm0, %v145_v8, %v146_v50  ;;  %v2203_v32 = vsel %vm139_vm0, %v144_v40, %v145_v8  ;;  %v3475_v11 = vrot.slane %v2176_v25, 2  ;;  %v1037_v50 = vmul.f32 -0.022060335, %v2106_v16  ;;  %v3496_v31 = vld [vmem:[#allocation14_spill] sm:$0xff] }
  0xed   :  { %3473 = vst [vmem:[#allocation38_spill] sm:$0xff] %v2195_v54  ;;  %3474 = vst [vmem:[#allocation41_spill] sm:$0xff] %v2203_v32  ;;  %v3312_v3 = vrot.slane %v2185_v33, 1  ;;  %v3314_v15 = vrot.slane %v2195_v54, 1  ;;  %v150_v57 = vadd.f32 %v147_v13, %v2176_v25  ;;  %v106_v40 = vadd.f32 %v104_v51, %v1897_v60  ;;  %v2220_v32 = vpop.permute.xlu1 %341  ;;  %v3483_v60 = vld [vmem:[#allocation47_spill] sm:$0xff]  ;;  %v3551_v25 = vld [vmem:[#allocation30_spill] sm:$0xff] }
  0xee   :  { %v196_v4 = vsel %vm188_vm1, %v3475_v11, %v195_v61  ;;  %v1085_v13 = vmul.f32 0.034730762, %v2106_v16  ;;  %v2242_v29 = vadd.f32 %v181_v42, %v1875_v39  ;;  %v3482_v39 = vld [vmem:[#allocation44_spill] sm:$0xff]  ;;  %vm237_vm2 = vcmp.lt.s32.totalorder %v1848_v30, 5 }
  0xef   :  { %v154_v8 = vsel %vm139_vm0, %v3312_v3, %v153_v6  ;;  %v140_v61 = vsel %vm139_vm0, %v3314_v15, %v136_v43  ;;  %v2230_v19 = vadd.f32 %v196_v4, %v150_v57  ;;  %v2236_v6 = vadd.f32 %v2106_v16, %v3478_v53 }
  0xf0   :  { %v2228_v11 = vadd.f32 %v154_v8, %v2185_v33  ;;  %v2238_v3 = vadd.f32 %v140_v61, %v106_v40  ;;  %v230_v43 = vmul.f32 0.014355996, %v2108_v22  ;;  %v379_v57 = vmul.f32 %v2220_v32, %v2220_v32  ;;  %v3480_v8 = vld [vmem:[#allocation39_spill] sm:$0xff]  ;;  %v3481_v61 = vld [vmem:[#allocation40_spill] sm:$0xff] }
  0xf1   :  { %3477 = vst [vmem:[#allocation43_spill] sm:$0xff] %v2230_v19  ;;  %v2249_v51 = vadd.f32 %v935_v17, %v3480_v8  ;;  %v2252_v53 = vmul.f32 -0.06079457, %v2106_v16  ;;  %v424_v40 = vmul.f32 0.022776961, %v2220_v32  ;;  %v2256_v54 = vadd.f32 %v989_v26, %v3481_v61  ;;  %v2274_v26 = vpop.permute.xlu0 %339  ;;  %v3491_v19 = vld [vmem:[#allocation12_spill] sm:$0xff] }
  0xf2   :  { %3476 = vst [vmem:[#allocation42_spill] sm:$0xff] %v2228_v11  ;;  %3479 = vst [vmem:[#allocation45_spill] sm:$0xff] %v2238_v3  ;;  %v2259_v42 = vadd.f32 %v1037_v50, %v3482_v39  ;;  %v2262_v15 = vadd.f32 %v1085_v13, %v3483_v60  ;;  %v2266_v4 = vadd.f32 %v2024_v7, %v2220_v32  ;;  %v279_v8 = vmul.f32 0.036518384, %v2108_v22  ;;  %v3488_v7 = vld [vmem:[#allocation11_spill] sm:$0xff] }
  0xf3   :  { %v2272_v0 = vadd.f32 %v379_v57, %v2027_v23  ;;  %v2278_v13 = vadd.f32 %v230_v43, %v1878_v62  ;;  %v180_v39 = vmul.f32 0.07039875, %v2159_v56  ;;  %v229_v22 = vmul.f32 0.014355996, %v2159_v56 }
  0xf4   :  { %3484 = vst [vmem:[#allocation46_spill] sm:$0xff] %v2266_v4  ;;  %v2286_v23 = vadd.f32 %v424_v40, %v1926_v2  ;;  %v2292_v62 = vadd.f32 %v2031_v41, %v2274_v26  ;;  %v378_v43 = vmul.f32 %v2274_v26, %v2274_v26  ;;  %v2297_v61 = vadd.f32 %v279_v8, %v3488_v7 }
  0xf5   :  { %3485 = vst [vmem:[#allocation10_spill] sm:$0xff] %v2272_v0  ;;  %3486 = vst [vmem:[#allocation39_spill] sm:$0xff] %v2278_v13  ;;  %v278_v60 = vmul.f32 0.036518384, %v2159_v56  ;;  %v423_v2 = vmul.f32 0.022776961, %v2274_v26  ;;  %v2310_v8 = vadd.f32 %v180_v39, %v3491_v19 }
  0xf6   :  { %3487 = vst [vmem:[#allocation40_spill] sm:$0xff] %v2292_v62  ;;  %3489 = vst [vmem:[#allocation44_spill] sm:$0xff] %v2297_v61  ;;  %v2303_v40 = vadd.f32 %v378_v43, %v2034_v48  ;;  %v398_v50 = vmul.f32 0.010839883, %v2274_v26  ;;  %v436_v41 = vrot.slane %v2292_v62, 1  ;;  %v484_v16 = vrot.slane %v2292_v62, 2 }
  0xf7   :  { %v426_v7 = vadd.f32 %v423_v2, %v1949_v5  ;;  %v472_v17 = vmul.f32 0.047664475, %v2220_v32  ;;  %v3492_v48 = vrot.slane %v2266_v4, 1  ;;  %v3493_v11 = vrot.slane %v2266_v4, 2  ;;  %v3494_v39 = vld [vmem:[#allocation13_spill] sm:$0xff] }
  0xf8   :  { %3490 = vst [vmem:[#allocation47_spill] sm:$0xff] %v2303_v40  ;;  %v443_v45 = vrot.slane %v2303_v40, 1  ;;  %v2326_v56 = vadd.f32 %v229_v22, %v3494_v39  ;;  %v2330_v13 = vadd.f32 %v278_v60, %v3496_v31  ;;  %v3498_v27 = vrot.slane %v2272_v0, 1  ;;  %v2348_v60 = vpop.permute.xlu0 %343 }
  0xf9   :  { %v440_v43 = vsel %vm139_vm0, %v436_v41, %v3492_v48  ;;  %v488_v57 = vsel %vm188_vm1, %v484_v16, %v3493_v11  ;;  %v429_v5 = vrot.slane %v426_v7, 1  ;;  %v399_v41 = vmul.f32 0.010839883, %v2220_v32 }
  0xfa   :  { %3495 = vst [vmem:[#allocation11_spill] sm:$0xff] %v2326_v56  ;;  %v441_v2 = vadd.f32 %v440_v43, %v2292_v62  ;;  %3497 = vst [vmem:[#allocation12_spill] sm:$0xff] %v2330_v13  ;;  %v400_v48 = vadd.f32 %v398_v50, %v1942_v49  ;;  %v447_v11 = vsel %vm139_vm0, %v443_v45, %v3498_v27  ;;  %v520_v16 = vmul.f32 -0.010847625, %v2220_v32  ;;  %v3550_v56 = vld [vmem:[#allocation8_spill] sm:$0xff] }
  0xfb   :  { %v3499_v22 = vrot.slane %v2286_v23, 1  ;;  %v2344_v43 = vadd.f32 %v447_v11, %v2303_v40  ;;  %v2353_v45 = vadd.f32 %v472_v17, %v1929_v34  ;;  %v568_v50 = vmul.f32 0.0032093672, %v2220_v32 }
  0xfc   :  { %v2346_v31 = vadd.f32 %v488_v57, %v441_v2  ;;  %v377_v34 = vadd.f32 %v2044_v59, %v2348_v60  ;;  %v425_v32 = vmul.f32 0.022776961, %v2348_v60  ;;  %vm286_vm3 = vcmp.lt.s32.totalorder %v1848_v30, 4 }
  0xfd   :  { %v433_v7 = vsel %vm139_vm0, %v429_v5, %v3499_v22  ;;  %3500 = vst [vmem:[#allocation13_spill] sm:$0xff] %v2344_v43  ;;  %3502 = vst [vmem:[#allocation58_spill] sm:$0xff] %v2353_v45  ;;  %v3504_v22 = vld [vmem:[#allocation49_spill] sm:$0xff]  ;;  %v473_v17 = vmul.f32 0.047664475, %v2348_v60  ;;  %v625_v43 = vpop.permute.xlu1 %624  ;;  %v3510_v13 = vrot.slane %v2266_v4, 3 }
  0xfe   :  { %3501 = vst [vmem:[#allocation14_spill] sm:$0xff] %v2346_v31  ;;  %v2355_v27 = vadd.f32 %v433_v7, %v400_v48  ;;  %v401_v19 = vadd.f32 %v399_v41, %v3504_v22  ;;  %v2370_v7 = vadd.f32 %v520_v16, %v1933_v38  ;;  %v380_v41 = vmul.f32 %v2348_v60, %v2348_v60  ;;  %v3506_v16 = vld [vmem:[#allocation50_spill] sm:$0xff] }
  0xff   :  { %v438_v22 = vrot.slane %v377_v34, 1  ;;  %v486_v38 = vrot.slane %v377_v34, 2  ;;  %v2382_v5 = vadd.f32 %v568_v50, %v3506_v16  ;;  %v428_v49 = vadd.f32 %v425_v32, %v2050_v58 }
 0x100   :  { %3503 = vst [vmem:[#allocation59_spill] sm:$0xff] %v2355_v27  ;;  %3505 = vst [vmem:[#allocation49_spill] sm:$0xff] %v2370_v7  ;;  %v383_v39 = vadd.f32 %v380_v41, %v2047_v1  ;;  %v534_v11 = vrot.slane %v377_v34, 3  ;;  %v471_v2 = vmul.f32 0.047664475, %v2274_v26  ;;  %v3508_v48 = vrot.slane %v2266_v4, 1 }
 0x101   :  { %3507 = vst [vmem:[#allocation50_spill] sm:$0xff] %v2382_v5  ;;  %v476_v57 = vadd.f32 %v473_v17, %v2053_v55  ;;  %v3509_v31 = vrot.slane %v2266_v4, 2  ;;  %v431_v16 = vrot.slane %v428_v49, 1  ;;  %v519_v32 = vmul.f32 -0.010847625, %v2274_v26 }
 0x102   :  { %v439_v59 = vsel %vm139_vm0, %v3508_v48, %v438_v22  ;;  %v445_v41 = vrot.slane %v383_v39, 1  ;;  %v493_v58 = vrot.slane %v383_v39, 2  ;;  %v535_v48 = vsel %vm237_vm2, %v3510_v13, %v534_v11 }
 0x103   :  { %v487_v50 = vsel %vm188_vm1, %v3509_v31, %v486_v38  ;;  %v442_v1 = vadd.f32 %v439_v59, %v2266_v4  ;;  %v479_v27 = vrot.slane %v476_v57, 2  ;;  %v541_v55 = vrot.slane %v383_v39, 3 }
 0x104   :  { %v3511_v17 = vrot.slane %v2286_v23, 1  ;;  %v3512_v49 = vrot.slane %v2272_v0, 1  ;;  %v3513_v38 = vrot.slane %v2272_v0, 2  ;;  %v2415_v61 = vadd.f32 %v471_v2, %v1952_v44 }
 0x105   :  { %v490_v22 = vadd.f32 %v487_v50, %v442_v1  ;;  %v3516_v11 = vrot.slane %v2353_v45, 2  ;;  %v567_v50 = vmul.f32 0.0032093672, %v2274_v26  ;;  %v582_v44 = vrot.slane %v377_v34, 4 }
 0x106   :  { %v432_v31 = vsel %vm139_vm0, %v3511_v17, %v431_v16  ;;  %v446_v59 = vsel %vm139_vm0, %v3512_v49, %v445_v41  ;;  %v494_v57 = vsel %vm188_vm1, %v3513_v38, %v493_v58  ;;  %3514 = vst [vmem:[#allocation60_spill] sm:$0xff] %v2415_v61  ;;  %v3518_v41 = vrot.slane %v2272_v0, 3  ;;  %v629_v38 = vpop.permute.xlu1 %628  ;;  %v3533_v49 = vld [vmem:[#allocation15_spill] sm:$0xff]  ;;  %v3548_v61 = vld [vmem:[#allocation22_spill] sm:$0xff] }
 0x107   :  { %v2417_v13 = vadd.f32 %v432_v31, %v401_v19  ;;  %v449_v23 = vadd.f32 %v446_v59, %v2272_v0  ;;  %v2424_v16 = vsel %vm188_vm1, %v3516_v11, %v479_v27  ;;  %v538_v1 = vadd.f32 %v535_v48, %v490_v22 }
 0x108   :  { %3517 = vst [vmem:[#allocation62_spill] sm:$0xff] %v2424_v16  ;;  %v542_v58 = vsel %vm237_vm2, %v3518_v41, %v541_v55  ;;  %v3325_v2 = vrot.slane %v2272_v0, 4  ;;  %v589_v31 = vrot.slane %v383_v39, 4  ;;  %v2436_v59 = vadd.f32 %v519_v32, %v1956_v37  ;;  %v3523_v32 = vld [vmem:[#allocation51_spill] sm:$0xff]  ;;  %v3525_v41 = vld [vmem:[#allocation48_spill] sm:$0xff] }
 0x109   :  { %3515 = vst [vmem:[#allocation61_spill] sm:$0xff] %v2417_v13  ;;  %v497_v17 = vadd.f32 %v494_v57, %v449_v23  ;;  %v3520_v26 = vrot.slane %v2266_v4, 4  ;;  %v521_v34 = vmul.f32 -0.010847625, %v2348_v60  ;;  %v2453_v57 = vadd.f32 %v567_v50, %v3523_v32  ;;  %v3529_v37 = vld [vmem:[#allocation19_spill] sm:$0xff]  ;;  %v3534_v50 = vld [vmem:[#allocation53_spill] sm:$0xff] }
 0x10a   :  { %3519 = vst [vmem:[#allocation63_spill] sm:$0xff] %v2436_v59  ;;  %v2449_v39 = vsel %vm286_vm3, %v3325_v2, %v589_v31  ;;  %v660_v23 = vmul.f32 %v625_v43, %v625_v43  ;;  %v569_v11 = vmul.f32 0.0032093672, %v2348_v60  ;;  %v852_v2 = vmul.f32 0.051895086, %v625_v43  ;;  %v3526_v60 = vld [vmem:[#allocation56_spill] sm:$0xff]  ;;  %v912_v62 = vpop.permute.xlu1 %911 }
 0x10b   :  { %v583_v48 = vsel %vm286_vm3, %v3520_v26, %v582_v44  ;;  %v2443_v55 = vadd.f32 %v542_v58, %v497_v17  ;;  %3522 = vst [vmem:[#allocation65_spill] sm:$0xff] %v2449_v39  ;;  %3524 = vst [vmem:[#allocation51_spill] sm:$0xff] %v2453_v57  ;;  %v2458_v58 = vadd.f32 %v2252_v53, %v3525_v41  ;;  %v708_v44 = vmul.f32 0.029846441, %v625_v43  ;;  %v3528_v41 = vld [vmem:[#allocation26_spill] sm:$0xff]  ;;  %v3530_v26 = vld [vmem:[#allocation57_spill] sm:$0xff] }
 0x10c   :  { %v586_v22 = vadd.f32 %v583_v48, %v538_v1  ;;  %v685_v1 = vmul.f32 0.04846297, %v625_v43  ;;  %v756_v17 = vmul.f32 0.0044772644, %v625_v43  ;;  %v804_v48 = vmul.f32 -0.056682907, %v625_v43 }
 0x10d   :  { %3521 = vst [vmem:[#allocation64_spill] sm:$0xff] %v2443_v55  ;;  %v2466_v19 = vadd.f32 %v521_v34, %v3526_v60  ;;  %v657_v27 = vadd.f32 %v3528_v41, %v625_v43  ;;  %v663_v39 = vadd.f32 %v660_v23, %v3529_v37  ;;  %v2472_v55 = vadd.f32 %v569_v11, %v3530_v26  ;;  %v3532_v31 = vld [vmem:[#allocation52_spill] sm:$0xff]  ;;  %v627_v60 = vpop.permute.xlu0 %626  ;;  %v3535_v53 = vld [vmem:[#allocation54_spill] sm:$0xff]  ;;  %v3536_v43 = vld [vmem:[#allocation55_spill] sm:$0xff] }
 0x10e   :  { %v2475_v5 = vadd.f32 %v685_v1, %v3532_v31  ;;  %v2478_v4 = vadd.f32 %v708_v44, %v3533_v49  ;;  %v2481_v32 = vadd.f32 %v756_v17, %v3534_v50  ;;  %v662_v34 = vmul.f32 %v629_v38, %v629_v38  ;;  %v631_v7 = vpop.permute.xlu1 %630  ;;  %v3545_v13 = vld [vmem:[#allocation20_spill] sm:$0xff] }
 0x10f   :  { %3527 = vst [vmem:[#allocation48_spill] sm:$0xff] %v2466_v19  ;;  %3531 = vst [vmem:[#allocation56_spill] sm:$0xff] %v2472_v55  ;;  %v2484_v57 = vadd.f32 %v804_v48, %v3535_v53  ;;  %v2487_v37 = vadd.f32 %v852_v2, %v3536_v43  ;;  %v710_v23 = vmul.f32 0.029846441, %v629_v38  ;;  %v758_v11 = vmul.f32 0.0044772644, %v629_v38 }
 0x110   :  { %v2491_v26 = vadd.f32 %v2055_v10, %v629_v38  ;;  %v806_v49 = vmul.f32 -0.056682907, %v629_v38  ;;  %v854_v44 = vmul.f32 0.051895086, %v629_v38  ;;  %v661_v31 = vmul.f32 %v627_v60, %v627_v60 }
 0x111   :  { %v686_v50 = vmul.f32 0.04846297, %v627_v60  ;;  %v709_v41 = vmul.f32 0.029846441, %v627_v60  ;;  %v2495_v48 = vadd.f32 %v662_v34, %v2057_v47  ;;  %v757_v53 = vmul.f32 0.0044772644, %v627_v60 }
 0x112   :  { %v805_v2 = vmul.f32 -0.056682907, %v627_v60  ;;  %v853_v43 = vmul.f32 0.051895086, %v627_v60  ;;  %v2497_v59 = vmul.f32 0.04, %v586_v22  ;;  %v2500_v1 = vadd.f32 %v710_v23, %v2059_v35 }
 0x113   :  { %v2503_v10 = vadd.f32 %v758_v11, %v2061_v18  ;;  %v943_v38 = vmul.f32 %v912_v62, %v912_v62  ;;  %v2506_v17 = vadd.f32 %v806_v49, %v2063_v28  ;;  %v2509_v55 = vadd.f32 %v854_v44, %v2065_v36  ;;  %v910_v28 = vpop.permute.xlu0 %909  ;;  %v3539_v49 = vld [vmem:[#allocation24_spill] sm:$0xff] }
 0x114   :  { %3537 = vst [vmem:[#allocation26_spill] sm:$0xff] %v2497_v59  ;;  %v2512_v47 = vadd.f32 %v2068_v52, %v627_v60  ;;  %v973_v34 = vmul.f32 0.016962267, %v912_v62  ;;  %v2515_v22 = vadd.f32 %v661_v31, %v2071_v14  ;;  %v2518_v35 = vadd.f32 %v686_v50, %v2074_v20  ;;  %v3538_v60 = vld [vmem:[#allocation16_spill] sm:$0xff]  ;;  %v3540_v50 = vld [vmem:[#allocation25_spill] sm:$0xff] }
 0x115   :  { %v2521_v18 = vadd.f32 %v709_v41, %v2077_v46  ;;  %v994_v23 = vmul.f32 -0.014417277, %v912_v62  ;;  %v2524_v11 = vadd.f32 %v757_v53, %v2080_v21  ;;  %v2527_v36 = vadd.f32 %v805_v2, %v2086_v9  ;;  %v3542_v9 = vld [vmem:[#allocation17_spill] sm:$0xff] }
 0x116   :  { %v2530_v52 = vadd.f32 %v853_v43, %v2089_v63  ;;  %v2533_v14 = vadd.f32 %v3538_v60, %v912_v62  ;;  %v2536_v20 = vadd.f32 %v943_v38, %v3539_v49  ;;  %v1042_v44 = vmul.f32 0.09023744, %v912_v62  ;;  %v3543_v49 = vld [vmem:[#allocation18_spill] sm:$0xff] }
 0x117   :  { %v1090_v46 = vmul.f32 0.0038096018, %v912_v62  ;;  %v669_v31 = vmul.f32 %v631_v7, %v631_v7  ;;  %v2539_v41 = vadd.f32 %v973_v34, %v3540_v50  ;;  %v1138_v21 = vmul.f32 0.01643908, %v912_v62 }
 0x118   :  { %v942_v53 = vmul.f32 %v910_v28, %v910_v28  ;;  %v972_v59 = vmul.f32 0.016962267, %v910_v28  ;;  %v2542_v2 = vadd.f32 %v994_v23, %v3542_v9  ;;  %v993_v63 = vmul.f32 -0.014417277, %v910_v28  ;;  %v3546_v23 = vld [vmem:[#allocation21_spill] sm:$0xff] }
 0x119   :  { %3541 = vst [vmem:[#allocation19_spill] sm:$0xff] %v2539_v41  ;;  %v1041_v43 = vmul.f32 0.09023744, %v910_v28  ;;  %v714_v19 = vmul.f32 -0.007824186, %v631_v7  ;;  %v2544_v0 = vadd.f32 %v657_v27, %v631_v7  ;;  %v2547_v16 = vadd.f32 %v1042_v44, %v3543_v49  ;;  %v914_v41 = vpop.permute.xlu0 %913  ;;  %v3552_v49 = vld [vmem:[#allocation27_spill] sm:$0xff] }
 0x11a   :  { %v1089_v60 = vmul.f32 0.0038096018, %v910_v28  ;;  %v1137_v40 = vmul.f32 0.01643908, %v910_v28  ;;  %v762_v38 = vmul.f32 -0.07742554, %v631_v7  ;;  %v2550_v34 = vadd.f32 %v3545_v13, %v910_v28 }
 0x11b   :  { %3544 = vst [vmem:[#allocation57_spill] sm:$0xff] %v2547_v16  ;;  %v2552_v62 = vadd.f32 %v669_v31, %v663_v39  ;;  %v689_v50 = vmul.f32 0.04720765, %v631_v7  ;;  %v2555_v9 = vadd.f32 %v1090_v46, %v3546_v23  ;;  %v2558_v45 = vadd.f32 %v1138_v21, %v3548_v61  ;;  %v3553_v39 = vld [vmem:[#allocation28_spill] sm:$0xff]  ;;  %v3554_v46 = vld [vmem:[#allocation29_spill] sm:$0xff] }
 0x11c   :  { %v2561_v27 = vadd.f32 %v942_v53, %v3550_v56  ;;  %v810_v3 = vmul.f32 -0.03375344, %v631_v7  ;;  %v2564_v44 = vadd.f32 %v972_v59, %v3551_v25  ;;  %v2567_v13 = vadd.f32 %v993_v63, %v3552_v49  ;;  %v3555_v61 = vld [vmem:[#allocation9_spill] sm:$0xff] }
 0x11d   :  { %3547 = vst [vmem:[#allocation52_spill] sm:$0xff] %v2555_v9  ;;  %3549 = vst [vmem:[#allocation15_spill] sm:$0xff] %v2558_v45  ;;  %v2570_v28 = vadd.f32 %v1041_v43, %v3553_v39  ;;  %v2573_v31 = vadd.f32 %v714_v19, %v2478_v4  ;;  %v2576_v23 = vadd.f32 %v1089_v60, %v3554_v46  ;;  %v635_v19 = vpop.permute.xlu1 %634  ;;  %v858_v49 = vmul.f32 0.036086172, %v631_v7  ;;  %v633_v39 = vpop.permute.xlu0 %632 }
 0x11e   :  { %v2579_v21 = vadd.f32 %v1137_v40, %v3555_v61  ;;  %v2583_v25 = vadd.f32 %v762_v38, %v2481_v32  ;;  %v2586_v59 = vadd.f32 %v689_v50, %v2475_v5  ;;  %v2592_v43 = vadd.f32 %v810_v3, %v2484_v57 }
 0x11f   :  { %v944_v38 = vmul.f32 %v914_v41, %v914_v41  ;;  %v995_v50 = vmul.f32 -0.014417277, %v914_v41  ;;  %v1043_v61 = vmul.f32 0.09023744, %v914_v41  ;;  %v671_v4 = vmul.f32 %v635_v19, %v635_v19 }
 0x120   :  { %3556 = vst [vmem:[#allocation53_spill] sm:$0xff] %v2579_v21  ;;  %v716_v63 = vmul.f32 -0.007824186, %v635_v19  ;;  %v2600_v3 = vadd.f32 %v2236_v6, %v914_v41  ;;  %v1091_v57 = vmul.f32 0.0038096018, %v914_v41  ;;  %v2604_v60 = vadd.f32 %v858_v49, %v2487_v37 }
 0x121   :  { %v1139_v40 = vmul.f32 0.01643908, %v914_v41  ;;  %v764_v53 = vmul.f32 -0.07742554, %v635_v19  ;;  %v2607_v5 = vadd.f32 %v2491_v26, %v635_v19  ;;  %v2610_v56 = vadd.f32 %v2512_v47, %v633_v39 }
 0x122   :  { %v2613_v46 = vadd.f32 %v944_v38, %v2249_v51  ;;  %v2616_v6 = vadd.f32 %v995_v50, %v2256_v54  ;;  %v812_v32 = vmul.f32 -0.03375344, %v635_v19  ;;  %v860_v41 = vmul.f32 0.036086172, %v635_v19 }
 0x123   :  { %v2619_v21 = vadd.f32 %v1043_v61, %v2259_v42  ;;  %v2622_v37 = vadd.f32 %v671_v4, %v2495_v48  ;;  %v2625_v26 = vadd.f32 %v716_v63, %v2500_v1  ;;  %v670_v49 = vmul.f32 %v633_v39, %v633_v39  ;;  %v2639_v1 = vpop.permute.xlu1 %917 }
 0x124   :  { %v2628_v47 = vadd.f32 %v1091_v57, %v2262_v15  ;;  %v2631_v51 = vadd.f32 %v1139_v40, %v2458_v58  ;;  %v2634_v54 = vadd.f32 %v764_v53, %v2503_v10  ;;  %v715_v19 = vmul.f32 -0.007824186, %v633_v39 }
 0x125   :  { %v729_v42 = vrot.slane %v2607_v5, 1  ;;  %v3348_v48 = vrot.slane %v2610_v56, 1  ;;  %v763_v4 = vmul.f32 -0.07742554, %v633_v39  ;;  %v2642_v63 = vadd.f32 %v812_v32, %v2506_v17 }
 0x126   :  { %3557 = vst [vmem:[#allocation54_spill] sm:$0xff] %v2631_v51  ;;  %v2646_v58 = vadd.f32 %v860_v41, %v2509_v55  ;;  %v690_v10 = vmul.f32 0.04720765, %v633_v39  ;;  %v2652_v61 = vadd.f32 %v670_v49, %v2515_v22  ;;  %v2657_v32 = vadd.f32 %v715_v19, %v2521_v18  ;;  %v916_v49 = vpop.permute.xlu0 %915 }
 0x127   :  { %v811_v15 = vmul.f32 -0.03375344, %v633_v39  ;;  %v730_v7 = vsel %vm139_vm0, %v3348_v48, %v729_v42  ;;  %v2666_v22 = vadd.f32 %v763_v4, %v2524_v11  ;;  %v2678_v11 = vpop.permute.xlu1 %921  ;;  %v859_v19 = vmul.f32 0.036086172, %v633_v39 }
 0x128   :  { %3558 = vst [vmem:[#allocation55_spill] sm:$0xff] %v2646_v58  ;;  %v2671_v18 = vadd.f32 %v690_v10, %v2518_v35  ;;  %v2682_v50 = vadd.f32 %v730_v7, %v2610_v56  ;;  %v951_v10 = vmul.f32 %v916_v49, %v916_v49  ;;  %v976_v57 = vmul.f32 0.02272638, %v916_v49 }
 0x129   :  { %v2685_v35 = vadd.f32 %v811_v15, %v2527_v36  ;;  %v2690_v38 = vmul.f32 0.02272638, %v2639_v1  ;;  %v948_v42 = vadd.f32 %v2550_v34, %v916_v49  ;;  %v999_v41 = vmul.f32 -0.073908746, %v916_v49 }
 0x12a   :  { %v960_v7 = vmul.f32 %v2678_v11, %v2678_v11  ;;  %v952_v36 = vmul.f32 %v2639_v1, %v2639_v1  ;;  %v1047_v15 = vmul.f32 -0.027614243, %v916_v49  ;;  %v1095_v40 = vmul.f32 -0.003092629, %v916_v49  ;;  %v920_v4 = vpop.permute.xlu0 %919 }
 0x12b   :  { %3559 = vst [vmem:[#allocation16_spill] sm:$0xff] %v2690_v38  ;;  %v980_v17 = vmul.f32 -0.013089103, %v2678_v11  ;;  %v2700_v55 = vmul.f32 -0.073908746, %v2639_v1  ;;  %v954_v48 = vadd.f32 %v951_v10, %v2561_v27  ;;  %v2704_v34 = vadd.f32 %v948_v42, %v2678_v11 }
 0x12c   :  { %v2707_v53 = vadd.f32 %v859_v19, %v2530_v52  ;;  %v2710_v45 = vmul.f32 -0.027614243, %v2639_v1  ;;  %v978_v51 = vadd.f32 %v976_v57, %v2564_v44  ;;  %v1005_v9 = vmul.f32 -0.03075323, %v2678_v11  ;;  %v2729_v44 = vpop.permute.xlu1 %925 }
 0x12d   :  { %v2715_v39 = vmul.f32 -0.003092629, %v2639_v1  ;;  %v2718_v38 = vmul.f32 -0.019977195, %v2639_v1  ;;  %v2720_v27 = vmul.f32 -0.019977195, %v916_v49  ;;  %v2722_v42 = vadd.f32 %v960_v7, %v954_v48 }
 0x12e   :  { %3560 = vst [vmem:[#allocation24_spill] sm:$0xff] %v2710_v45  ;;  %v1002_v52 = vadd.f32 %v999_v41, %v2567_v13  ;;  %v1050_v19 = vadd.f32 %v1047_v15, %v2570_v28  ;;  %v1098_v10 = vadd.f32 %v1095_v40, %v2576_v23  ;;  %v2727_v45 = vadd.f32 %v980_v17, %v978_v51  ;;  %v2742_v17 = vpop.permute.xlu0 %923 }
 0x12f   :  { %3561 = vst [vmem:[#allocation25_spill] sm:$0xff] %v2715_v39  ;;  %3562 = vst [vmem:[#allocation17_spill] sm:$0xff] %v2718_v38  ;;  %v1018_v57 = vrot.slane %v2704_v34, 1  ;;  %v1053_v39 = vmul.f32 0.04197333, %v2678_v11  ;;  %v953_v16 = vmul.f32 %v920_v4, %v920_v4  ;;  %v950_v13 = vadd.f32 %v2600_v3, %v920_v4 }
 0x130   :  { %3563 = vst [vmem:[#allocation18_spill] sm:$0xff] %v2720_v27  ;;  %3564 = vst [vmem:[#allocation20_spill] sm:$0xff] %v2722_v42  ;;  %v1001_v38 = vmul.f32 -0.073908746, %v920_v4  ;;  %v2733_v49 = vadd.f32 %v1005_v9, %v1002_v52  ;;  %v1049_v7 = vmul.f32 -0.027614243, %v920_v4  ;;  %v962_v51 = vmul.f32 %v2729_v44, %v2729_v44 }
 0x131   :  { %3565 = vst [vmem:[#allocation21_spill] sm:$0xff] %v2727_v45  ;;  %3566 = vst [vmem:[#allocation22_spill] sm:$0xff] %v2729_v44  ;;  %v1007_v40 = vmul.f32 -0.03075323, %v2729_v44  ;;  %v1101_v41 = vmul.f32 0.05961903, %v2678_v11  ;;  %v2746_v9 = vadd.f32 %v950_v13, %v2729_v44  ;;  %v949_v3 = vadd.f32 %v2533_v14, %v2639_v1 }
 0x132   :  { %3567 = vst [vmem:[#allocation8_spill] sm:$0xff] %v2733_v49  ;;  %v1055_v15 = vmul.f32 0.04197333, %v2729_v44  ;;  %v2751_v52 = vadd.f32 %v1053_v39, %v1050_v19  ;;  %v956_v48 = vadd.f32 %v953_v16, %v2613_v46  ;;  %v1004_v28 = vadd.f32 %v1001_v38, %v2616_v6  ;;  %v3570_v39 = vld [vmem:[#allocation38_spill] sm:$0xff] }
 0x133   :  { %v1097_v27 = vmul.f32 -0.003092629, %v920_v4  ;;  %v1052_v45 = vadd.f32 %v1049_v7, %v2619_v21  ;;  %v2758_v42 = vadd.f32 %v949_v3, %v2742_v17  ;;  %v961_v13 = vmul.f32 %v2742_v17, %v2742_v17  ;;  %v3572_v16 = vld [vmem:[#allocation34_spill] sm:$0xff] }
 0x134   :  { %3568 = vst [vmem:[#allocation30_spill] sm:$0xff] %v2751_v52  ;;  %v2762_v58 = vadd.f32 %v962_v51, %v956_v48  ;;  %v2764_v14 = vadd.f32 %v1007_v40, %v1004_v28  ;;  %v1103_v1 = vmul.f32 0.05961903, %v2729_v44  ;;  %v3571_v19 = vrot.slane %v3570_v39, 1  ;;  %v3579_v28 = vld [vmem:[#allocation32_spill] sm:$0xff] }
 0x135   :  { %v3573_v46 = vrot.slane %v3572_v16, 1  ;;  %v1020_v21 = vrot.slane %v2746_v9, 1  ;;  %v2774_v38 = vadd.f32 %v1055_v15, %v1052_v45  ;;  %v955_v7 = vadd.f32 %v952_v36, %v2536_v20  ;;  %v3581_v20 = vld [vmem:[#allocation41_spill] sm:$0xff]  ;;  %v3588_v16 = vld [vmem:[#allocation36_spill] sm:$0xff] }
 0x136   :  { %3569 = vst [vmem:[#allocation27_spill] sm:$0xff] %v2764_v14  ;;  %v1019_v48 = vrot.slane %v2758_v42, 1  ;;  %v2780_v40 = vadd.f32 %v1101_v41, %v1098_v10  ;;  %v2783_v3 = vmul.f32 -0.05429389, %v2678_v11  ;;  %v2785_v39 = vmul.f32 -0.019977195, %v920_v4 }
 0x137   :  { %v141_v6 = vsel %vm139_vm0, %v3573_v46, %v3571_v19  ;;  %3574 = vst [vmem:[#allocation28_spill] sm:$0xff] %v2774_v38  ;;  %v1100_v45 = vadd.f32 %v1097_v27, %v2628_v47  ;;  %v2789_v15 = vadd.f32 %v961_v13, %v955_v7  ;;  %v2805_v13 = vadd.f32 %v2700_v55, %v2542_v2  ;;  %v3580_v55 = vld [vmem:[#allocation23_spill] sm:$0xff]  ;;  %v3591_v19 = vld [vmem:[#allocation45_spill] sm:$0xff] }
 0x138   :  { %3575 = vst [vmem:[#allocation29_spill] sm:$0xff] %v2780_v40  ;;  %3576 = vst [vmem:[#allocation9_spill] sm:$0xff] %v2783_v3  ;;  %v1021_v46 = vsel %vm139_vm0, %v1019_v48, %v1020_v21  ;;  %v2808_v7 = vmul.f32 -0.03075323, %v2742_v17  ;;  %v2816_v51 = vmul.f32 0.04197333, %v2742_v17  ;;  %v142_v2 = vadd.f32 %v141_v6, %v3579_v28 }
 0x139   :  { %3577 = vst [vmem:[#allocation38_spill] sm:$0xff] %v2785_v39  ;;  %v2796_v11 = vadd.f32 %v1103_v1, %v1100_v45  ;;  %v2812_v1 = vsel %vm139_vm0, %v1018_v57, %v1019_v48  ;;  %v2820_v41 = vadd.f32 %v1021_v46, %v2758_v42  ;;  %v149_v27 = vadd.f32 %v3581_v20, %v3580_v55  ;;  %v3604_v3 = vld [vmem:[#allocation42_spill] sm:$0xff] }
 0x13a   :  { %v3582_v47 = vrot.slane %v2185_v33, 1  ;;  %v3583_v57 = vrot.slane %v2127_v24, 1  ;;  %v3584_v23 = vrot.slane %v2242_v29, 2  ;;  %v3585_v10 = vrot.slane %v2310_v8, 2 }
 0x13b   :  { %3578 = vst [vmem:[#allocation34_spill] sm:$0xff] %v2796_v11  ;;  %v3587_v28 = vrot.slane %v2166_v12, 2  ;;  %v3589_v21 = vrot.slane %v3588_v16, 2  ;;  %v3594_v12 = vrot.slane %v2185_v33, 2  ;;  %v3596_v36 = vrot.slane %v2127_v24, 2 }
 0x13c   :  { %v155_v48 = vsel %vm139_vm0, %v3583_v57, %v3582_v47  ;;  %v189_v46 = vsel %vm188_vm1, %v3585_v10, %v3584_v23  ;;  %v3586_v6 = vmov %v3585_v10  ;;  %v3590_v47 = vrot.slane %v3580_v55, 2  ;;  %v3592_v10 = vld [vmem:[#allocation33_spill] sm:$0xff] }
 0x13d   :  { %v156_v4 = vadd.f32 %v155_v48, %v2127_v24  ;;  %v190_v20 = vsel %vm188_vm1, %v3587_v28, %v3586_v6  ;;  %v192_v45 = vadd.f32 %v189_v46, %v3591_v19  ;;  %v3593_v8 = vrot.slane %v3592_v10, 2  ;;  %v3602_v46 = vld [vmem:[#allocation35_spill] sm:$0xff] }
 0x13e   :  { %v197_v57 = vsel %vm188_vm1, %v3590_v47, %v3589_v21  ;;  %v191_v48 = vadd.f32 %v190_v20, %v142_v2  ;;  %v3595_v28 = vmov %v3594_v12  ;;  %v3597_v47 = vld [vmem:[#allocation39_spill] sm:$0xff] }
 0x13f   :  { %v198_v23 = vadd.f32 %v197_v57, %v149_v27  ;;  %v203_v6 = vsel %vm188_vm1, %v3594_v12, %v3593_v8  ;;  %v204_v21 = vsel %vm188_vm1, %v3596_v36, %v3595_v28  ;;  %v3598_v29 = vrot.slane %v3597_v47, 3  ;;  %v3599_v2 = vld [vmem:[#allocation11_spill] sm:$0xff] }
 0x140   :  { %v3600_v20 = vrot.slane %v3599_v2, 3  ;;  %v3603_v57 = vrot.slane %v3602_v46, 3  ;;  %v205_v12 = vadd.f32 %v204_v21, %v156_v4  ;;  %v206_v40 = vadd.f32 %v203_v6, %v3604_v3  ;;  %v3605_v36 = vld [vmem:[#allocation31_spill] sm:$0xff] }
 0x141   :  { %v3606_v28 = vrot.slane %v3605_v36, 3  ;;  %v3607_v47 = vrot.slane %v3588_v16, 3  ;;  %v3609_v2 = vrot.slane %v3580_v55, 3  ;;  %v3610_v4 = vrot.slane %v3592_v10, 3 }
 0x142   :  { %v238_v19 = vsel %vm237_vm2, %v3600_v20, %v3598_v29  ;;  %v3601_v27 = vmov %v3600_v20  ;;  %v3611_v3 = vrot.slane %v2185_v33, 3  ;;  %v3613_v6 = vrot.slane %v2127_v24, 3 }
 0x143   :  { %v239_v8 = vsel %vm237_vm2, %v3603_v57, %v3601_v27  ;;  %v241_v38 = vadd.f32 %v238_v19, %v192_v45  ;;  %v245_v11 = vsel %vm237_vm2, %v3607_v47, %v3606_v28  ;;  %v3608_v29 = vmov %v3607_v47  ;;  %v3614_v27 = vld [vmem:[#allocation43_spill] sm:$0xff]  ;;  %v3615_v28 = vld [vmem:[#allocation44_spill] sm:$0xff] }
 0x144   :  { %v240_v52 = vadd.f32 %v239_v8, %v191_v48  ;;  %v246_v20 = vsel %vm237_vm2, %v3609_v2, %v3608_v29  ;;  %v252_v45 = vsel %vm237_vm2, %v3611_v3, %v3610_v4  ;;  %v3612_v48 = vmov %v3611_v3  ;;  %v3617_v29 = vld [vmem:[#allocation12_spill] sm:$0xff]  ;;  %v3620_v3 = vld [vmem:[#allocation37_spill] sm:$0xff] }
 0x145   :  { %v253_v21 = vsel %vm237_vm2, %v3613_v6, %v3612_v48  ;;  %v247_v19 = vadd.f32 %v246_v20, %v198_v23  ;;  %v248_v46 = vadd.f32 %v245_v11, %v3614_v27  ;;  %v255_v8 = vadd.f32 %v252_v45, %v206_v40 }
 0x146   :  { %v254_v57 = vadd.f32 %v253_v21, %v205_v12  ;;  %v3616_v47 = vrot.slane %v3615_v28, 4  ;;  %v3618_v2 = vrot.slane %v3617_v29, 4  ;;  %v3621_v49 = vrot.slane %v3620_v3, 4 }
 0x147   :  { %v3622_v23 = vrot.slane %v3605_v36, 4  ;;  %v3623_v11 = vrot.slane %v3588_v16, 4  ;;  %v3625_v20 = vrot.slane %v3580_v55, 4  ;;  %v3626_v36 = vrot.slane %v3592_v10, 4  ;;  %v3634_v10 = vld [vmem:[#allocation61_spill] sm:$0xff] }
 0x148   :  { %v287_v39 = vsel %vm286_vm3, %v3618_v2, %v3616_v47  ;;  %v3619_v4 = vmov %v3618_v2  ;;  %v3627_v27 = vrot.slane %v2185_v33, 4  ;;  %v3629_v55 = vrot.slane %v2127_v24, 4  ;;  %v3636_v33 = vld [vmem:[#allocation59_spill] sm:$0xff]  ;;  %v3637_v24 = vld [vmem:[#allocation10_spill] sm:$0xff] }
 0x149   :  { %v288_v14 = vsel %vm286_vm3, %v3621_v49, %v3619_v4  ;;  %v294_v40 = vsel %vm286_vm3, %v3623_v11, %v3622_v23  ;;  %v3624_v12 = vmov %v3623_v11  ;;  %v2928_v6 = vadd.f32 %v287_v39, %v241_v38  ;;  %v3632_v38 = vld [vmem:[#allocation60_spill] sm:$0xff] }
 0x14a   :  { %v295_v45 = vsel %vm286_vm3, %v3625_v20, %v3624_v12  ;;  %v2926_v48 = vadd.f32 %v288_v14, %v240_v52  ;;  %v297_v49 = vadd.f32 %v294_v40, %v248_v46  ;;  %v301_v28 = vsel %vm286_vm3, %v3627_v27, %v3626_v36  ;;  %v3630_v52 = vld [vmem:[#allocation58_spill] sm:$0xff]  ;;  %v3639_v12 = vld [vmem:[#allocation47_spill] sm:$0xff]  ;;  %v3641_v36 = vld [vmem:[#allocation48_spill] sm:$0xff] }
 0x14b   :  { %v296_v21 = vadd.f32 %v295_v45, %v247_v19  ;;  %v3628_v16 = vmov %v3627_v27  ;;  %v3631_v14 = vrot.slane %v3630_v52, 2  ;;  %v3633_v39 = vrot.slane %v3632_v38, 2  ;;  %v3635_v46 = vld [vmem:[#allocation62_spill] sm:$0xff] }
 0x14c   :  { %v302_v47 = vsel %vm286_vm3, %v3629_v55, %v3628_v16  ;;  %v483_v29 = vadd.f32 %v3635_v46, %v3634_v10  ;;  %v304_v4 = vadd.f32 %v301_v28, %v255_v8  ;;  %v306_v23 = vmul.f32 0.04, %v297_v49  ;;  %v3643_v16 = vld [vmem:[#allocation49_spill] sm:$0xff]  ;;  %v3646_v8 = vld [vmem:[#allocation63_spill] sm:$0xff] }
 0x14d   :  { %v481_v19 = vsel %vm188_vm1, %v3633_v39, %v3631_v14  ;;  %v303_v2 = vadd.f32 %v302_v47, %v254_v57  ;;  %v305_v3 = vmul.f32 0.04, %v296_v21  ;;  %v3638_v40 = vrot.slane %v3637_v24, 2  ;;  %v3648_v39 = vld [vmem:[#allocation13_spill] sm:$0xff] }
 0x14e   :  { %v482_v11 = vadd.f32 %v481_v19, %v3636_v33  ;;  %v3640_v20 = vrot.slane %v3639_v12, 2  ;;  %v3642_v27 = vrot.slane %v3641_v36, 3  ;;  %v3644_v55 = vrot.slane %v3643_v16, 3  ;;  %v3649_v33 = vld [vmem:[#allocation46_spill] sm:$0xff] }
 0x14f   :  { %v3647_v21 = vrot.slane %v3646_v8, 3  ;;  %v307_v28 = vmul.f32 0.04, %v303_v2  ;;  %v308_v47 = vmul.f32 0.04, %v304_v4  ;;  %v309_v14 = vmul.f32 %v305_v3, %v305_v3  ;;  %v3653_v8 = vld [vmem:[#allocation14_spill] sm:$0xff] }
 0x150   :  { %v495_v45 = vsel %vm188_vm1, %v3640_v20, %v3638_v40  ;;  %v528_v52 = vsel %vm237_vm2, %v3644_v55, %v3642_v27  ;;  %v3645_v57 = vmov %v3644_v55  ;;  %v310_v38 = vmul.f32 %v306_v23, %v306_v23  ;;  %v3651_v20 = vld [vmem:[#allocation40_spill] sm:$0xff] }
 0x151   :  { %v529_v49 = vsel %vm237_vm2, %v3647_v21, %v3645_v57  ;;  %v496_v19 = vadd.f32 %v495_v45, %v3648_v39  ;;  %v531_v46 = vadd.f32 %v528_v52, %v483_v29  ;;  %v3650_v40 = vrot.slane %v3649_v33, 3  ;;  %v3656_v29 = vld [vmem:[#allocation56_spill] sm:$0xff]  ;;  %v3658_v45 = vld [vmem:[#allocation50_spill] sm:$0xff] }
 0x152   :  { %v530_v10 = vadd.f32 %v529_v49, %v482_v11  ;;  %v3652_v36 = vrot.slane %v3651_v20, 3  ;;  %v311_v16 = vsub.f32 %v307_v28, %v309_v14  ;;  %v312_v55 = vsub.f32 %v308_v47, %v310_v38  ;;  %v3661_v49 = vld [vmem:[#allocation51_spill] sm:$0xff] }
 0x153   :  { %v3654_v2 = vrot.slane %v3637_v24, 3  ;;  %v3655_v4 = vrot.slane %v3639_v12, 3  ;;  %v3657_v11 = vrot.slane %v3656_v29, 4  ;;  %v3659_v52 = vrot.slane %v3658_v45, 4 }
 0x154   :  { %v536_v27 = vsel %vm237_vm2, %v3652_v36, %v3650_v40  ;;  %v3662_v28 = vrot.slane %v3661_v49, 4  ;;  %v3663_v14 = vrot.slane %v3649_v33, 4  ;;  %v3664_v38 = vrot.slane %v3651_v20, 4  ;;  %v3667_v33 = vld [vmem:[#allocation64_spill] sm:$0xff] }
 0x155   :  { %v537_v44 = vadd.f32 %v536_v27, %v3653_v8  ;;  %v543_v3 = vsel %vm237_vm2, %v3655_v4, %v3654_v2  ;;  %v576_v57 = vsel %vm286_vm3, %v3659_v52, %v3657_v11  ;;  %v3660_v21 = vmov %v3659_v52  ;;  %v3668_v4 = vld [vmem:[#allocation65_spill] sm:$0xff] }
 0x156   :  { %v544_v23 = vadd.f32 %v543_v3, %v496_v19  ;;  %v577_v47 = vsel %vm286_vm3, %v3662_v28, %v3660_v21  ;;  %v584_v39 = vsel %vm286_vm3, %v3664_v38, %v3663_v14  ;;  %1219 = vrsqrt.f32 %v311_v16  ;;  %v3669_v3 = vld [vmem:[#allocation26_spill] sm:$0xff] }
 0x157   :  { %v3001_v19 = vadd.f32 %v577_v47, %v530_v10  ;;  %v3003_v40 = vadd.f32 %v576_v57, %v531_v46  ;;  %v585_v36 = vadd.f32 %v584_v39, %v537_v44  ;;  %1221 = vrsqrt.f32 %v312_v55 }
 0x158   :  { %v3665_v27 = vrot.slane %v3637_v24, 4  ;;  %v3666_v8 = vrot.slane %v3639_v12, 4  ;;  %v593_v20 = vadd.f32 %v3668_v4, %v3667_v33  ;;  %v599_v29 = vmul.f32 %v3669_v3, %v3669_v3 }
 0x159   :  { %v594_v10 = vmul.f32 0.04, %v585_v36  ;;  %v3670_v46 = vrot.slane %v2625_v26, 1  ;;  %v3671_v44 = vrot.slane %v2657_v32, 1  ;;  %v3673_v55 = vrot.slane %v2573_v31, 1 }
 0x15a   :  { %v591_v2 = vsel %vm286_vm3, %v3666_v8, %v3665_v27  ;;  %v597_v45 = vmul.f32 0.04, %v593_v20  ;;  %v3674_v57 = vrot.slane %v2610_v56, 1  ;;  %v3675_v26 = vrot.slane %v2544_v0, 1 }
 0x15b   :  { %v592_v16 = vadd.f32 %v591_v2, %v544_v23  ;;  %v723_v24 = vsel %vm139_vm0, %v3671_v44, %v3670_v46  ;;  %v3672_v12 = vmov %v3671_v44  ;;  %v598_v28 = vmul.f32 %v594_v10, %v594_v10 }
 0x15c   :  { %v724_v11 = vsel %vm139_vm0, %v3673_v55, %v3672_v12  ;;  %v726_v23 = vadd.f32 %v723_v24, %v2671_v18  ;;  %v731_v21 = vsel %vm139_vm0, %v3675_v26, %v3674_v57  ;;  %v3676_v31 = vrot.slane %v2622_v37, 1 }
 0x15d   :  { %v725_v52 = vadd.f32 %v724_v11, %v2586_v59  ;;  %v596_v49 = vmul.f32 0.04, %v592_v16  ;;  %v732_v32 = vadd.f32 %v731_v21, %v2544_v0  ;;  %v3677_v47 = vrot.slane %v2652_v61, 1 }
 0x15e   :  { %v601_v14 = vsub.f32 %v597_v45, %v599_v29  ;;  %v3679_v38 = vrot.slane %v2552_v62, 1  ;;  %v3680_v27 = vrot.slane %v2634_v54, 2  ;;  %v3681_v8 = vrot.slane %v2666_v22, 2 }
 0x15f   :  { %v737_v59 = vsel %vm139_vm0, %v3677_v47, %v3676_v31  ;;  %v3678_v18 = vmov %v3677_v47  ;;  %v600_v33 = vsub.f32 %v596_v49, %v598_v28  ;;  %v3683_v3 = vrot.slane %v2583_v25, 2 }
 0x160   :  { %v738_v39 = vsel %vm139_vm0, %v3679_v38, %v3678_v18  ;;  %v740_v36 = vadd.f32 %v737_v59, %v2652_v61  ;;  %v771_v2 = vsel %vm188_vm1, %v3681_v8, %v3680_v27  ;;  %v3682_v20 = vmov %v3681_v8  ;;  %v1220_v59 = vpop.eup %1219 }
 0x161   :  { %v739_v4 = vadd.f32 %v738_v39, %v2552_v62  ;;  %v772_v29 = vsel %vm188_vm1, %v3683_v3, %v3682_v20  ;;  %v774_v16 = vadd.f32 %v771_v2, %v726_v23  ;;  %1223 = vrsqrt.f32 %v601_v14  ;;  %v1222_v27 = vpop.eup %1221 }
 0x162   :  { %v773_v10 = vadd.f32 %v772_v29, %v725_v52  ;;  %v3684_v54 = vrot.slane %v2607_v5, 2  ;;  %v3685_v46 = vrot.slane %v2610_v56, 2  ;;  %v3687_v12 = vrot.slane %v2544_v0, 2 }
 0x163   :  { %1225 = vrsqrt.f32 %v600_v33  ;;  %v3688_v11 = vrot.slane %v2622_v37, 2  ;;  %v3689_v45 = vrot.slane %v2652_v61, 2  ;;  %v3691_v57 = vrot.slane %v2552_v62, 2 }
 0x164   :  { %v778_v44 = vsel %vm188_vm1, %v3685_v46, %v3684_v54  ;;  %v3686_v24 = vmov %v3685_v46  ;;  %v3692_v49 = vrot.slane %v2642_v63, 3  ;;  %v3693_v28 = vrot.slane %v2685_v35, 3 }
 0x165   :  { %v779_v25 = vsel %vm188_vm1, %v3687_v12, %v3686_v24  ;;  %v781_v55 = vadd.f32 %v778_v44, %v2682_v50  ;;  %v785_v52 = vsel %vm188_vm1, %v3689_v45, %v3688_v11  ;;  %v3690_v23 = vmov %v3689_v45 }
 0x166   :  { %v780_v22 = vadd.f32 %v779_v25, %v732_v32  ;;  %v786_v26 = vsel %vm188_vm1, %v3691_v57, %v3690_v23  ;;  %v788_v21 = vadd.f32 %v785_v52, %v740_v36  ;;  %v819_v50 = vsel %vm237_vm2, %v3693_v28, %v3692_v49 }
 0x167   :  { %v3694_v32 = vmov %v3693_v28  ;;  %v3695_v31 = vrot.slane %v2592_v43, 3  ;;  %v787_v14 = vadd.f32 %v786_v26, %v739_v4  ;;  %v822_v38 = vadd.f32 %v819_v50, %v774_v16  ;;  %v3710_v26 = vld [vmem:[#allocation55_spill] sm:$0xff] }
 0x168   :  { %v3696_v39 = vrot.slane %v2607_v5, 3  ;;  %v3697_v63 = vrot.slane %v2610_v56, 3  ;;  %v315_v8 = vmul.f32 %v1220_v59, %v2926_v48  ;;  %v3699_v43 = vrot.slane %v2544_v0, 3 }
 0x169   :  { %v820_v47 = vsel %vm237_vm2, %v3695_v31, %v3694_v32  ;;  %v3700_v4 = vrot.slane %v2622_v37, 3  ;;  %v3701_v20 = vrot.slane %v2652_v61, 3  ;;  %v316_v29 = vmul.f32 %v1222_v27, %v2928_v6  ;;  %v3714_v27 = vld [vmem:[#allocation20_spill] sm:$0xff] }
 0x16a   :  { %v821_v18 = vadd.f32 %v820_v47, %v773_v10  ;;  %v826_v36 = vsel %vm237_vm2, %v3697_v63, %v3696_v39  ;;  %v3698_v35 = vmov %v3697_v63  ;;  %v3703_v10 = vrot.slane %v2552_v62, 3 }
 0x16b   :  { %v827_v2 = vsel %vm237_vm2, %v3699_v43, %v3698_v35  ;;  %v829_v33 = vadd.f32 %v826_v36, %v781_v55  ;;  %v833_v3 = vsel %vm237_vm2, %v3701_v20, %v3700_v4  ;;  %v3702_v48 = vmov %v3701_v20  ;;  %v1224_v31 = vpop.eup %1223 }
 0x16c   :  { %v828_v16 = vadd.f32 %v827_v2, %v780_v22  ;;  %v834_v54 = vsel %vm237_vm2, %v3703_v10, %v3702_v48  ;;  %v836_v46 = vadd.f32 %v833_v3, %v788_v21  ;;  %v864_v24 = vrot.slane %v2604_v60, 4 }
 0x16d   :  { %v835_v44 = vadd.f32 %v834_v54, %v787_v14  ;;  %v865_v12 = vrot.slane %v2707_v53, 4  ;;  %v3704_v25 = vrot.slane %v2607_v5, 4  ;;  %v3705_v55 = vrot.slane %v2610_v56, 4  ;;  %v1226_v63 = vpop.eup %1225 }
 0x16e   :  { %v3707_v11 = vrot.slane %v2544_v0, 4  ;;  %v878_v23 = vrot.slane %v2552_v62, 4  ;;  %v879_v60 = vrot.slane %v2652_v61, 4  ;;  %v3708_v53 = vrot.slane %v2762_v58, 1 }
 0x16f   :  { %v874_v6 = vsel %vm286_vm3, %v3705_v55, %v3704_v25  ;;  %v3706_v22 = vmov %v3705_v55  ;;  %v3709_v5 = vrot.slane %v2789_v15, 1  ;;  %v3711_v21 = vrot.slane %v3710_v26, 4  ;;  %v3725_v26 = vld [vmem:[#allocation24_spill] sm:$0xff] }
 0x170   :  { %v875_v45 = vsel %vm286_vm3, %v3707_v11, %v3706_v22  ;;  %v877_v52 = vadd.f32 %v874_v6, %v829_v33  ;;  %v868_v56 = vsel %vm286_vm3, %v864_v24, %v865_v12  ;;  %v3712_v61 = vrot.slane %v2622_v37, 4 }
 0x171   :  { %v1028_v57 = vsel %vm139_vm0, %v3709_v5, %v3708_v53  ;;  %v867_v0 = vsel %vm286_vm3, %v865_v12, %v3711_v21  ;;  %v876_v49 = vadd.f32 %v875_v45, %v828_v16  ;;  %v3153_v28 = vadd.f32 %v868_v56, %v821_v18 }
 0x172   :  { %v3155_v62 = vadd.f32 %v867_v0, %v822_v38  ;;  %v881_v50 = vsel %vm286_vm3, %v879_v60, %v3712_v61  ;;  %v882_v32 = vsel %vm286_vm3, %v878_v23, %v879_v60  ;;  %v886_v39 = vmul.f32 0.04, %v877_v52 }
 0x173   :  { %v883_v47 = vadd.f32 %v882_v32, %v835_v44  ;;  %v884_v59 = vadd.f32 %v881_v50, %v836_v46  ;;  %v885_v14 = vmul.f32 0.04, %v876_v49  ;;  %v1031_v36 = vadd.f32 %v1028_v57, %v2789_v15  ;;  %v3724_v57 = vld [vmem:[#allocation57_spill] sm:$0xff] }
 0x174   :  { %v605_v18 = vmul.f32 %v1224_v31, %v3003_v40  ;;  %v1023_v38 = vadd.f32 %v2812_v1, %v2704_v34  ;;  %v3713_v37 = vmov %v3709_v5  ;;  %v3715_v35 = vrot.slane %v3714_v27, 1 }
 0x175   :  { %v604_v2 = vmul.f32 %v1226_v63, %v3001_v19  ;;  %v887_v33 = vmul.f32 0.04, %v883_v47  ;;  %v888_v4 = vmul.f32 0.04, %v884_v59  ;;  %v889_v20 = vmul.f32 %v885_v14, %v885_v14 }
 0x176   :  { %v1029_v43 = vsel %vm139_vm0, %v3715_v35, %v3713_v37  ;;  %v1115_v3 = vrot.slane %v2758_v42, 3  ;;  %v3175_v16 = vadd.f32 %v605_v18, %v316_v29  ;;  %v890_v40 = vmul.f32 %v886_v39, %v886_v39  ;;  %v3730_v37 = vld [vmem:[#allocation19_spill] sm:$0xff]  ;;  %v3731_v35 = vld [vmem:[#allocation16_spill] sm:$0xff] }
 0x177   :  { %v1030_v48 = vadd.f32 %v1029_v43, %v3714_v27  ;;  %v3716_v1 = vrot.slane %v2746_v9, 2  ;;  %v3717_v10 = vrot.slane %v2758_v42, 2  ;;  %v1122_v46 = vrot.slane %v2789_v15, 3 }
 0x178   :  { %v606_v19 = vadd.f32 %v604_v2, %v315_v8  ;;  %v891_v44 = vsub.f32 %v887_v33, %v889_v20  ;;  %v892_v12 = vsub.f32 %v888_v4, %v890_v40  ;;  %v3719_v25 = vrot.slane %v2704_v34, 2  ;;  %v3732_v4 = vld [vmem:[#allocation22_spill] sm:$0xff]  ;;  %v3734_v40 = vld [vmem:[#allocation25_spill] sm:$0xff] }
 0x179   :  { %v1069_v54 = vsel %vm188_vm1, %v3717_v10, %v3716_v1  ;;  %v3718_v29 = vmov %v3717_v10  ;;  %v3720_v6 = vrot.slane %v2762_v58, 2  ;;  %v3721_v22 = vrot.slane %v2789_v15, 2 }
 0x17a   :  { %v1072_v24 = vadd.f32 %v1069_v54, %v2820_v41  ;;  %v1070_v55 = vsel %vm188_vm1, %v3719_v25, %v3718_v29  ;;  %1227 = vrsqrt.f32 %v891_v44  ;;  %v3723_v41 = vrot.slane %v3714_v27, 2 }
 0x17b   :  { %v1076_v11 = vsel %vm188_vm1, %v3721_v22, %v3720_v6  ;;  %v1071_v8 = vadd.f32 %v1070_v55, %v1023_v38  ;;  %v3722_v45 = vmov %v3721_v22  ;;  %v1009_v60 = vadd.f32 %v2808_v7, %v2805_v13 }
 0x17c   :  { %v1077_v52 = vsel %vm188_vm1, %v3723_v41, %v3722_v45  ;;  %v1079_v23 = vadd.f32 %v1076_v11, %v1031_v36  ;;  %v1163_v53 = vrot.slane %v2758_v42, 4  ;;  %1229 = vrsqrt.f32 %v892_v12 }
 0x17d   :  { %v1078_v5 = vadd.f32 %v1077_v52, %v1030_v48  ;;  %v1051_v21 = vadd.f32 %v3725_v26, %v3724_v57  ;;  %v981_v0 = vmul.f32 -0.013089103, %v2742_v17  ;;  %v3726_v56 = vrot.slane %v2746_v9, 3  ;;  %v3740_v57 = vld [vmem:[#allocation54_spill] sm:$0xff] }
 0x17e   :  { %v1121_v61 = vrot.slane %v3714_v27, 3  ;;  %v1170_v50 = vrot.slane %v2789_v15, 4  ;;  %v3727_v13 = vrot.slane %v2704_v34, 3  ;;  %v3728_v32 = vrot.slane %v2762_v58, 3  ;;  %v3741_v26 = vld [vmem:[#allocation38_spill] sm:$0xff] }
 0x17f   :  { %v1117_v49 = vsel %vm237_vm2, %v1115_v3, %v3726_v56  ;;  %v1057_v47 = vadd.f32 %v2816_v51, %v1051_v21  ;;  %v1012_v63 = vrot.slane %v1009_v60, 1  ;;  %v1162_v36 = vrot.slane %v2704_v34, 4 }
 0x180   :  { %v1118_v42 = vsel %vm237_vm2, %v3727_v13, %v1115_v3  ;;  %v1120_v7 = vadd.f32 %v1117_v49, %v1072_v24  ;;  %v1124_v31 = vsel %vm237_vm2, %v1122_v46, %v3728_v32  ;;  %v1125_v14 = vsel %vm237_vm2, %v1121_v61, %v1122_v46  ;;  %v3733_v3 = vld [vmem:[#allocation52_spill] sm:$0xff]  ;;  %v3742_v61 = vld [vmem:[#allocation15_spill] sm:$0xff] }
 0x181   :  { %v1119_v59 = vadd.f32 %v1118_v42, %v1071_v8  ;;  %v1127_v39 = vadd.f32 %v1124_v31, %v1079_v23  ;;  %v1126_v15 = vadd.f32 %v1125_v14, %v1078_v5  ;;  %v3729_v18 = vrot.slane %v2746_v9, 4 }
 0x182   :  { %v979_v43 = vadd.f32 %v3731_v35, %v3730_v37  ;;  %v1102_v2 = vmul.f32 0.05961903, %v2742_v17  ;;  %v1169_v33 = vrot.slane %v3714_v27, 4  ;;  %v1151_v20 = vmul.f32 -0.05429389, %v3732_v4  ;;  %v3736_v27 = vld [vmem:[#allocation27_spill] sm:$0xff] }
 0x183   :  { %v1165_v38 = vsel %vm286_vm3, %v1163_v53, %v3729_v18  ;;  %v1099_v48 = vadd.f32 %v3734_v40, %v3733_v3  ;;  %v1166_v34 = vsel %vm286_vm3, %v1162_v36, %v1163_v53  ;;  %v3735_v9 = vrot.slane %v2762_v58, 4  ;;  %v3738_v58 = vld [vmem:[#allocation8_spill] sm:$0xff]  ;;  %v3748_v18 = vld [vmem:[#allocation53_spill] sm:$0xff]  ;;  %v3750_v37 = vld [vmem:[#allocation30_spill] sm:$0xff] }
 0x184   :  { %v1168_v51 = vadd.f32 %v1165_v38, %v1120_v7  ;;  %v983_v10 = vadd.f32 %v981_v0, %v979_v43  ;;  %v1167_v54 = vadd.f32 %v1166_v34, %v1119_v59  ;;  %v1173_v46 = vsel %vm286_vm3, %v1169_v33, %v1170_v50  ;;  %v1228_v6 = vpop.eup %1227  ;;  %v3744_v7 = vld [vmem:[#allocation21_spill] sm:$0xff]  ;;  %v3749_v38 = vld [vmem:[#allocation18_spill] sm:$0xff] }
 0x185   :  { %v1172_v1 = vsel %vm286_vm3, %v1170_v50, %v3735_v9  ;;  %v3737_v24 = vrot.slane %v3736_v27, 1  ;;  %v1060_v29 = vrot.slane %v1057_v47, 2  ;;  %v1174_v25 = vadd.f32 %v1173_v46, %v1126_v15  ;;  %v3743_v50 = vld [vmem:[#allocation17_spill] sm:$0xff]  ;;  %v3745_v47 = vld [vmem:[#allocation34_spill] sm:$0xff]  ;;  %v3746_v15 = vld [vmem:[#allocation28_spill] sm:$0xff] }
 0x186   :  { %v1175_v44 = vadd.f32 %v1172_v1, %v1127_v39  ;;  %v1177_v55 = vmul.f32 0.04, %v1168_v51  ;;  %v1105_v22 = vadd.f32 %v1102_v2, %v1099_v48  ;;  %v3739_v11 = vrot.slane %v3738_v58, 1  ;;  %v1230_v52 = vpop.eup %1229  ;;  %v3752_v51 = vld [vmem:[#allocation29_spill] sm:$0xff] }
 0x187   :  { %v1014_v12 = vsel %vm139_vm0, %v1012_v63, %v3737_v24  ;;  %v1176_v45 = vmul.f32 0.04, %v1167_v54  ;;  %v1150_v23 = vmul.f32 -0.05429389, %v2742_v17  ;;  %v895_v60 = vmul.f32 %v1228_v6, %v3153_v28  ;;  %v3753_v4 = vld [vmem:[#allocation9_spill] sm:$0xff] }
 0x188   :  { %v1015_v8 = vsel %vm139_vm0, %v3739_v11, %v1012_v63  ;;  %v1179_v41 = vmul.f32 0.04, %v1175_v44  ;;  %v1178_v53 = vmul.f32 0.04, %v1174_v25  ;;  %v1181_v5 = vmul.f32 %v1177_v55, %v1177_v55 }
 0x189   :  { %v1148_v21 = vadd.f32 %v3741_v26, %v3740_v57  ;;  %v1017_v0 = vadd.f32 %v1014_v12, %v983_v10  ;;  %v896_v56 = vmul.f32 %v1230_v52, %v3155_v62  ;;  %v1180_v49 = vmul.f32 %v1176_v45, %v1176_v45 }
 0x18a   :  { %v1147_v13 = vadd.f32 %v3743_v50, %v3742_v61  ;;  %v897_v42 = vadd.f32 %v895_v60, %v606_v19  ;;  %v1016_v32 = vadd.f32 %v1015_v8, %v3744_v7  ;;  %v1183_v31 = vsub.f32 %v1179_v41, %v1181_v5 }
 0x18b   :  { %v1109_v17 = vrot.slane %v3745_v47, 3  ;;  %v1154_v59 = vadd.f32 %v1151_v20, %v1148_v21  ;;  %v898_v28 = vadd.f32 %v896_v56, %v3175_v16  ;;  %v1182_v14 = vsub.f32 %v1178_v53, %v1180_v49 }
 0x18c   :  { %v1108_v39 = vrot.slane %v1105_v22, 3  ;;  %v1153_v63 = vadd.f32 %v1150_v23, %v1147_v13  ;;  %v3747_v36 = vrot.slane %v3746_v15, 2  ;;  %1231 = vrsqrt.f32 %v1183_v31 }
 0x18d   :  { %v1146_v19 = vadd.f32 %v3749_v38, %v3748_v18  ;;  %v3751_v35 = vrot.slane %v3750_v37, 2  ;;  %1233 = vrsqrt.f32 %v1182_v14  ;;  %v1107_v33 = vrot.slane %v3752_v51, 3 }
 0x18e   :  { %v1062_v62 = vsel %vm188_vm1, %v1060_v29, %v3747_v36  ;;  %v1157_v3 = vrot.slane %v1154_v59, 4  ;;  %v1156_v40 = vrot.slane %v1153_v63, 4  ;;  %v1110_v48 = vsel %vm237_vm2, %v1108_v39, %v1109_v17 }
 0x18f   :  { %v1063_v43 = vsel %vm188_vm1, %v3751_v35, %v1060_v29  ;;  %v1065_v2 = vadd.f32 %v1062_v62, %v1017_v0  ;;  %v1152_v20 = vadd.f32 %v3753_v4, %v1146_v19  ;;  %v1111_v34 = vsel %vm237_vm2, %v1107_v33, %v1108_v39 }
 0x190   :  { %v1064_v16 = vadd.f32 %v1063_v43, %v1016_v32  ;;  %v1158_v54 = vsel %vm286_vm3, %v1156_v40, %v1157_v3 }
 0x191   :  { %v1113_v9 = vadd.f32 %v1110_v48, %v1065_v2  ;;  %v1155_v10 = vrot.slane %v1152_v20, 4 }
 0x192   :  { %v1112_v1 = vadd.f32 %v1111_v34, %v1064_v16 }
 0x193   :  { %v1159_v46 = vsel %vm286_vm3, %v1155_v10, %v1156_v40  ;;  %v1161_v44 = vadd.f32 %v1158_v54, %v1113_v9 }
 0x194   :  { %v1160_v24 = vadd.f32 %v1159_v46, %v1112_v1 }
 0x196   :  { %v1232_v27 = vpop.eup %1231 }
 0x197   :  { %v1234_v12 = vpop.eup %1233  ;;  %v1187_v29 = vmul.f32 %v1232_v27, %v1161_v44 }
 0x198   :  { %v1186_v25 = vmul.f32 %v1234_v12, %v1160_v24 }
 0x199   :  { %v1189_v55 = vadd.f32 %v1187_v29, %v898_v28 }
 0x19a   :  { %v1188_v6 = vadd.f32 %v1186_v25, %v897_v42 }
 0x19b   :  { %v1191_v22 = vmul.f32 0.25, %v1189_v55 }
 0x19c   :  { %v1190_v58 = vmul.f32 0.25, %v1188_v6 }
 0x19d   :  { %1193 = vst [vmem:[#allocation5 + $0x8] sm:$0xff] %v1191_v22 }
 0x19e   :  { %1192 = vst [vmem:[#allocation5] sm:$0xff] %v1190_v58 }
 0x19f   :  { %1268 = shalt.err (!%p1265_p12)
}
 0x1a0   :  { %s1269_s28 = scalar_lea.hbm %s3301_s1, 256 }
 0x1a1   :  { %p1270_p13 = scmp.ne.s32.totalorder %s3301_s1, %s1269_s28  ;;  %p1273_p0 = scmp.lt.u32.totalorder %s1269_s28, %s3301_s1 }
 0x1a3   :  { %p1275_p1 = pnand %p1273_p0, %p1270_p13 }
 0x1a5   :  { %1278 = shalt.err (!%p1275_p1)
}
 0x1a6   :  { %1205 = dma.vmem_to_hbm [thread:$0]  %s1200_s24, 256, %s3301_s1, [#allocation4], %s1284_s16, %s1284_s16, %s1285_s17  }
 0x1a7   :  { %1281 = dma.done.wait [#allocation4], 256  }
 0x1a8   :  { %1282 = vsyncadd [#allocation4], 4294967040 }
 0x1a9   :  { %1209 = vsyncpa [#allocation3], 1 }
 0x1aa   :  { %1210 = vsyncpa [#allocation4], 1 }

</bundles_post_ra>
